<compile_context>
chip_gen: v5e
topology: v5e:2x2
jax: 0.10.0
libtpu: 0.0.40
codegen_flags: <defaults>
</compile_context>

<pallas_src>
import jax
import jax.numpy as jnp
import numpy as np
from jax.experimental import pallas as pl
from jax.experimental.pallas import tpu as pltpu


def _round_up(x, m):
    return (x + m - 1) // m * m


_COMPILER_PARAMS = pltpu.CompilerParams(
    dimension_semantics=("parallel", "parallel"),
    vmem_limit_bytes=48 * 1024 * 1024,
)


# ---------------------------------------------------------------------------
# Kernels
# ---------------------------------------------------------------------------
def _matmul_bias_relu_kernel(x_ref, w_ref, b_ref, o_ref):
    """o = relu(x @ w + b); x is an im2col tile (m_tile, K), one MXU matmul."""
    acc = jnp.dot(x_ref[...], w_ref[...], preferred_element_type=jnp.float32)
    o_ref[...] = jnp.maximum(acc + b_ref[...], 0.0).astype(o_ref.dtype)


def _make_phase_kernel(tap_meta, wh, m_tile, cin, fuse_pointwise):
    """3x3 stride-2 conv on a phase-decomposed, haloed row tile.

    The 9 taps are packed along K into a (m_tile, 9*cin) bf16 VMEM scratch so
    the conv reduces to a single K=576 MXU matmul; BN bias + ReLU (and the
    optional fused 1x1 conv_out) run in the epilogue on the resident tile.
    """
    def build_lhs(x_ref, lhs_ref):
        for ti, (p, qh, qw) in enumerate(tap_meta):
            off = qh * wh + qw                      # static offsets only
            lhs_ref[:, ti * cin:(ti + 1) * cin] = x_ref[p, off:off + m_tile, :]

    if fuse_pointwise:
        def kernel(x_ref, w_ref, b_ref, w2_ref, b2_ref, o_ref, lhs_ref):
            build_lhs(x_ref, lhs_ref)
            acc = jnp.dot(lhs_ref[...], w_ref[...],
                          preferred_element_type=jnp.float32)
            hid = jnp.maximum(acc + b_ref[...], 0.0).astype(jnp.bfloat16)
            acc2 = jnp.dot(hid, w2_ref[...], preferred_element_type=jnp.float32)
            o_ref[...] = jnp.maximum(acc2 + b2_ref[...], 0.0).astype(o_ref.dtype)
    else:
        def kernel(x_ref, w_ref, b_ref, o_ref, lhs_ref):
            build_lhs(x_ref, lhs_ref)
            acc = jnp.dot(lhs_ref[...], w_ref[...],
                          preferred_element_type=jnp.float32)
            o_ref[...] = jnp.maximum(acc + b_ref[...], 0.0).astype(o_ref.dtype)
    return kernel


# ---------------------------------------------------------------------------
# JAX glue: im2col (conv1) / stride-phase packing with haloed row tiles (conv2/3)
# ---------------------------------------------------------------------------
def _im2col(x, ks, stride, padding, ho, wo, m_pad):
    n, _, _, c = x.shape
    xp = jnp.pad(x, ((0, 0), (padding, padding), (padding, padding), (0, 0)))
    cols = []
    for kh in range(ks):
        for kw in range(ks):
            cols.append(xp[:, kh:kh + (ho - 1) * stride + 1:stride,
                           kw:kw + (wo - 1) * stride + 1:stride, :])
    patches = jnp.concatenate(cols, axis=-1).reshape(n, ho * wo, ks * ks * c)
    if m_pad > ho * wo:
        patches = jnp.pad(patches, ((0, 0), (0, m_pad - ho * wo), (0, 0)))
    return patches


def _phase_pack_tiled(x, th, n_tiles, wh):
    """(N,H,W,C) -> (N, T, 4, (th+2)*wh, C): per row tile, the 4 stride-phase
    planes, each flattened with +1 halo row and +1 flat-slice slack row."""
    n, _, _, c = x.shape
    ho_pad = th * n_tiles
    hh = ho_pad + 2
    xp = jnp.pad(x, ((0, 0), (1, 1), (1, 1), (0, 0)))
    tiles = []
    for ph in range(2):
        for pw in range(2):
            pln = xp[:, ph::2, pw::2, :]
            pln = pln[:, :hh, :wh, :]
            pln = jnp.pad(pln, ((0, 0), (0, hh - pln.shape[1]),
                                (0, wh - pln.shape[2]), (0, 0)))
            main = pln[:, :ho_pad].reshape(n, n_tiles, th, wh, c)
            h0 = pln[:, th:ho_pad + 1:th][:, :, None]
            h1 = pln[:, th + 1:ho_pad + 2:th][:, :, None]
            tiles.append(jnp.concatenate([main, h0, h1], axis=2)
                         .reshape(n, n_tiles, (th + 2) * wh, c))
    return jnp.stack(tiles, axis=2)            # (N, T, 4, (th+2)*wh, C)


# ---------------------------------------------------------------------------
# Layer wrappers
# ---------------------------------------------------------------------------
def conv1_forward(x, w, b, *, ks, stride, padding, real_cout, m_target=4096):
    n, h, wdim, c = x.shape
    k = ks * ks * c
    cout = w.shape[-1]
    ho = (h + 2 * padding - ks) // stride + 1
    wo = (wdim + 2 * padding - ks) // stride + 1
    m = ho * wo
    m_tile = min(_round_up(m, 8), _round_up(m_target, 8))
    n_tiles = -(-m // m_tile)
    m_tile = _round_up(-(-m // n_tiles), 8)
    m_pad = m_tile * n_tiles

    patches = _im2col(x.astype(jnp.bfloat16), ks, stride, padding, ho, wo, m_pad)

    flops = 2 * n * m_pad * k * cout
    bytes_accessed = int(patches.size * patches.dtype.itemsize
                         + w.size * w.dtype.itemsize + b.size * b.dtype.itemsize
                         + n * m_pad * cout * 2)

    out = pl.pallas_call(
        _matmul_bias_relu_kernel,
        out_shape=jax.ShapeDtypeStruct((n, m_pad, cout), jnp.bfloat16),
        grid_spec=pltpu.PrefetchScalarGridSpec(
            num_scalar_prefetch=0,
            grid=(n, n_tiles),
            in_specs=[pl.BlockSpec((None, m_tile, k), lambda bi, ti: (bi, ti, 0)),
                      pl.BlockSpec((k, cout), lambda bi, ti: (0, 0)),
                      pl.BlockSpec((1, cout), lambda bi, ti: (0, 0))],
            out_specs=pl.BlockSpec((None, m_tile, cout),
                                   lambda bi, ti: (bi, ti, 0)),
        ),
        compiler_params=_COMPILER_PARAMS,
        cost_estimate=pl.CostEstimate(flops=flops, transcendentals=0,
                                      bytes_accessed=bytes_accessed),
    )(patches, w, b)
    return out[:, :m, :real_cout].reshape(n, ho, wo, real_cout)


def conv3x3s2_forward(x, w, b, *, real_cout, pointwise=None,
                      out_dtype=jnp.bfloat16, m_target=4096):
    n, h, wdim, c = x.shape
    ho = (h + 2 - 3) // 2 + 1
    wo = (wdim + 2 - 3) // 2 + 1
    wh = _round_up(wo + 1, 8)                 # aligned plane width (incl. halo col)
    th = max(1, m_target // wh)
    if th > ho:
        th = ho
    n_tiles = -(-ho // th)
    th = -(-ho // n_tiles)
    ho_pad = th * n_tiles
    m_tile = th * wh
    r_rows = th + 2                           # +1 halo row, +1 flat-slice slack

    xt = _phase_pack_tiled(x.astype(jnp.bfloat16), th, n_tiles, wh)

    # tap -> (phase plane, row offset, col offset) inside the phase plane
    tap_meta = tuple(((kh % 2) * 2 + (kw % 2), kh // 2, kw // 2)
                     for kh in range(3) for kw in range(3))

    cout = w.shape[-1]
    c_final = cout if pointwise is None else pointwise[0].shape[-1]
    kernel = _make_phase_kernel(tap_meta, wh, m_tile, c, pointwise is not None)

    in_specs = [
        pl.BlockSpec((None, None, 4, r_rows * wh, c),
                     lambda bi, ti: (bi, ti, 0, 0, 0)),
        pl.BlockSpec((9 * c, cout), lambda bi, ti: (0, 0)),
        pl.BlockSpec((1, cout), lambda bi, ti: (0, 0)),
    ]
    inputs = [xt, w, b]
    if pointwise is not None:
        w2, b2 = pointwise
        in_specs += [pl.BlockSpec((cout, c_final), lambda bi, ti: (0, 0)),
                     pl.BlockSpec((1, c_final), lambda bi, ti: (0, 0))]
        inputs += [w2, b2]

    flops = 2 * n * n_tiles * m_tile * 9 * c * cout
    if pointwise is not None:
        flops += 2 * n * n_tiles * m_tile * cout * c_final
    bytes_accessed = int(xt.size * xt.dtype.itemsize
                         + sum(int(a.size) * a.dtype.itemsize for a in inputs[1:])
                         + n * n_tiles * m_tile * c_final
                         * np.dtype(out_dtype).itemsize)

    out = pl.pallas_call(
        kernel,
        out_shape=jax.ShapeDtypeStruct((n, n_tiles * m_tile, c_final), out_dtype),
        grid_spec=pltpu.PrefetchScalarGridSpec(
            num_scalar_prefetch=0,
            grid=(n, n_tiles),
            in_specs=in_specs,
            out_specs=pl.BlockSpec((None, m_tile, c_final),
                                   lambda bi, ti: (bi, ti, 0)),
            scratch_shapes=[pltpu.VMEM((m_tile, 9 * c), jnp.bfloat16)],
        ),
        compiler_params=_COMPILER_PARAMS,
        cost_estimate=pl.CostEstimate(flops=flops, transcendentals=0,
                                      bytes_accessed=bytes_accessed),
    )(*inputs)

    out = out.reshape(n, ho_pad, wh, c_final)[:, :ho, :wo, :real_cout]
    return out


def spatial_path(x_nhwc, params):
    x = x_nhwc.astype(jnp.bfloat16)
    f1 = conv1_forward(x, *params["conv1"], ks=7, stride=2, padding=3,
                       real_cout=64)
    f2 = conv3x3s2_forward(f1, *params["conv2"], real_cout=64)
    # conv3 with conv_out (1x1, 64->128) fused into its epilogue; final f32.
    f3 = conv3x3s2_forward(f2, *params["conv3"], pointwise=params["conv_out"],
                           real_cout=128, out_dtype=jnp.float32)
    return f3


# ---------------------------------------------------------------------------
# Deterministic parameter construction (matches PyTorch __init__ shapes)
# ---------------------------------------------------------------------------
def init_conv_bn(key, cin, cout, ks, cout_pad=None):
    # kaiming_normal_(a=1): gain = sqrt(2/(1+1)) = 1, std = 1/sqrt(fan_in)
    fan_in = cin * ks * ks
    std = 1.0 / (fan_in ** 0.5)
    w = jax.random.normal(key, (ks, ks, cin, cout), jnp.float32) * std
    # BatchNorm2d eval-mode defaults, folded: scale into W, bias stays f32.
    eps = 1e-5
    gamma = jnp.ones((cout,), jnp.float32)
    beta = jnp.zeros((cout,), jnp.float32)
    rmean = jnp.zeros((cout,), jnp.float32)
    rvar = jnp.ones((cout,), jnp.float32)
    scale = gamma / jnp.sqrt(rvar + eps)
    bias = beta - rmean * scale
    wk = (w * scale).reshape(ks * ks * cin, cout)     # tap-major K packing
    if cout_pad is not None and cout_pad > cout:      # lane-dense 128-wide output
        wk = jnp.pad(wk, ((0, 0), (0, cout_pad - cout)))
        bias = jnp.pad(bias, ((0, cout_pad - cout),))
    return wk.astype(jnp.bfloat16), bias.reshape(1, -1).astype(jnp.float32)


def make_params(key):
    k1, k2, k3, k4 = jax.random.split(key, 4)
    return {
        "conv1": init_conv_bn(k1, 3, 64, 7, cout_pad=128),    # (147,128),(1,128)
        "conv2": init_conv_bn(k2, 64, 64, 3, cout_pad=128),   # (576,128),(1,128)
        "conv3": init_conv_bn(k3, 64, 64, 3),                 # (576,64),(1,64)
        "conv_out": init_conv_bn(k4, 64, 128, 1),             # (64,128),(1,128)
    }


if __name__ == "__main__":
    key = jax.random.PRNGKey(0)
    pkey, xkey = jax.random.split(key)
    params = make_params(pkey)

    # PyTorch-style NCHW input: (batch=2, channels=3, H=16, W=16)
    x_nchw = jax.random.normal(xkey, (2, 3, 16, 16), jnp.float32)
    x_nhwc = jnp.transpose(x_nchw, (0, 2, 3, 1))

    fwd = jax.jit(spatial_path)
    out_nhwc = fwd(x_nhwc, params)                     # (2, 2, 2, 128)
    out_nchw = jnp.transpose(out_nhwc, (0, 3, 1, 2))   # back to NCHW
    jax.block_until_ready(out_nchw)

    assert out_nchw.shape == (2, 128, 2, 2), out_nchw.shape
    print("KERNEL_OK")
</pallas_src>

<mosaic_0001>
module attributes {stable_mosaic.version = 11 : i64} {
  func.func @_matmul_bias_relu_kernel(%arg0: i32, %arg1: i32, %arg2: memref<1x64x147xbf16, #tpu.memory_space<vmem>>, %arg3: memref<147x128xbf16, #tpu.memory_space<vmem>>, %arg4: memref<1x128xf32, #tpu.memory_space<vmem>>, %arg5: memref<1x64x128xbf16, #tpu.memory_space<vmem>>) attributes {dimension_semantics = [#tpu.dimension_semantics<parallel>, #tpu.dimension_semantics<parallel>], iteration_bounds = array<i64: 2, 1>, scalar_prefetch = 0 : i64, scratch_operands = 0 : i64, tpu.core_type = #tpu.core_type<tc>, window_params = [{transform_indices = @transform_0, window_bounds = array<i64: 1, 64, 147>}, {pipeline_mode = #tpu.pipeline_mode<synchronous>, transform_indices = @transform_1, window_bounds = array<i64: 147, 128>}, {pipeline_mode = #tpu.pipeline_mode<synchronous>, transform_indices = @transform_2, window_bounds = array<i64: 1, 128>}, {transform_indices = @transform_3, window_bounds = array<i64: 1, 64, 128>}]} {
    %c0 = arith.constant 0 : index
    %c0_0 = arith.constant 0 : index
    %c0_1 = arith.constant 0 : index
    %0 = vector.load %arg2[%c0, %c0_0, %c0_1] : memref<1x64x147xbf16, #tpu.memory_space<vmem>>, vector<1x64x147xbf16>
    %1 = vector.shape_cast %0 : vector<1x64x147xbf16> to vector<64x147xbf16>
    %c0_2 = arith.constant 0 : index
    %c0_3 = arith.constant 0 : index
    %2 = vector.load %arg3[%c0_2, %c0_3] : memref<147x128xbf16, #tpu.memory_space<vmem>>, vector<147x128xbf16>
    %cst = arith.constant dense<0.000000e+00> : vector<64x128xf32>
    %3 = tpu.matmul %1, %2, %cst {dimension_numbers = #tpu.dot_dimension_numbers<[1], [0], [0], [1], [0, 0, 1, 1], [], []>} : vector<64x147xbf16>, vector<147x128xbf16>, vector<64x128xf32> -> vector<64x128xf32>
    %c0_4 = arith.constant 0 : index
    %c0_5 = arith.constant 0 : index
    %4 = vector.load %arg4[%c0_4, %c0_5] : memref<1x128xf32, #tpu.memory_space<vmem>>, vector<1x128xf32>
    %5 = vector.broadcast %4 : vector<1x128xf32> to vector<64x128xf32>
    %6 = arith.addf %3, %5 : vector<64x128xf32>
    %cst_6 = arith.constant 0.000000e+00 : f32
    %7 = vector.broadcast %cst_6 : f32 to vector<64x128xf32>
    %8 = arith.maximumf %6, %7 : vector<64x128xf32>
    %9 = arith.truncf %8 : vector<64x128xf32> to vector<64x128xbf16>
    %c0_7 = arith.constant 0 : index
    %c0_8 = arith.constant 0 : index
    %c0_9 = arith.constant 0 : index
    %10 = vector.load %arg5[%c0_7, %c0_8, %c0_9] : memref<1x64x128xbf16, #tpu.memory_space<vmem>>, vector<1x64x128xbf16>
    %11 = vector.shape_cast %10 : vector<1x64x128xbf16> to vector<64x128xbf16>
    %12 = vector.shape_cast %9 : vector<64x128xbf16> to vector<1x64x128xbf16>
    tpu.vector_store %arg5[%c0_7, %c0_8, %c0_9], %12 {strides = array<i32>} : memref<1x64x128xbf16, #tpu.memory_space<vmem>>, vector<1x64x128xbf16>,
    return
  }
  func.func @transform_0(%arg0: i32, %arg1: i32) -> (i32, i32, i32) {
    %c0_i32 = arith.constant 0 : i32
    %c0_i32_0 = arith.constant 0 : i32
    return %arg0, %arg1, %c0_i32 : i32, i32, i32
  }
  func.func @transform_1(%arg0: i32, %arg1: i32) -> (i32, i32) {
    %c0_i32 = arith.constant 0 : i32
    %c0_i32_0 = arith.constant 0 : i32
    %c0_i32_1 = arith.constant 0 : i32
    return %c0_i32, %c0_i32_0 : i32, i32
  }
  func.func @transform_2(%arg0: i32, %arg1: i32) -> (i32, i32) {
    %c0_i32 = arith.constant 0 : i32
    %c0_i32_0 = arith.constant 0 : i32
    %c0_i32_1 = arith.constant 0 : i32
    return %c0_i32, %c0_i32_0 : i32, i32
  }
  func.func @transform_3(%arg0: i32, %arg1: i32) -> (i32, i32, i32) {
    %c0_i32 = arith.constant 0 : i32
    %c0_i32_0 = arith.constant 0 : i32
    return %arg0, %arg1, %c0_i32 : i32, i32, i32
  }
}

module attributes {stable_mosaic.version = 11 : i64} {
  func.func @kernel(%arg0: i32, %arg1: i32, %arg2: memref<1x1x4x48x64xbf16, #tpu.memory_space<vmem>>, %arg3: memref<576x128xbf16, #tpu.memory_space<vmem>>, %arg4: memref<1x128xf32, #tpu.memory_space<vmem>>, %arg5: memref<1x32x128xbf16, #tpu.memory_space<vmem>>, %arg6: memref<32x576xbf16, #tpu.memory_space<vmem>>) attributes {dimension_semantics = [#tpu.dimension_semantics<parallel>, #tpu.dimension_semantics<parallel>], iteration_bounds = array<i64: 2, 1>, scalar_prefetch = 0 : i64, scratch_operands = 1 : i64, tpu.core_type = #tpu.core_type<tc>, window_params = [{transform_indices = @transform_0, window_bounds = array<i64: 1, 1, 4, 48, 64>}, {pipeline_mode = #tpu.pipeline_mode<synchronous>, transform_indices = @transform_1, window_bounds = array<i64: 576, 128>}, {pipeline_mode = #tpu.pipeline_mode<synchronous>, transform_indices = @transform_2, window_bounds = array<i64: 1, 128>}, {transform_indices = @transform_3, window_bounds = array<i64: 1, 32, 128>}]} {
    %c0 = arith.constant 0 : index
    %c0_0 = arith.constant 0 : index
    %c0_1 = arith.constant 0 : index
    %c0_2 = arith.constant 0 : index
    %c0_3 = arith.constant 0 : index
    %0 = vector.load %arg2[%c0, %c0_0, %c0_1, %c0_2, %c0_3] : memref<1x1x4x48x64xbf16, #tpu.memory_space<vmem>>, vector<1x1x1x32x64xbf16>
    %1 = vector.shape_cast %0 : vector<1x1x1x32x64xbf16> to vector<32x64xbf16>
    %c0_4 = arith.constant 0 : index
    %c0_5 = arith.constant 0 : index
    %2 = vector.load %arg6[%c0_4, %c0_5] : memref<32x576xbf16, #tpu.memory_space<vmem>>, vector<32x64xbf16>
    tpu.vector_store %arg6[%c0_4, %c0_5], %1 {strides = array<i32>} : memref<32x576xbf16, #tpu.memory_space<vmem>>, vector<32x64xbf16>,
    %c0_6 = arith.constant 0 : index
    %c0_7 = arith.constant 0 : index
    %c1 = arith.constant 1 : index
    %c0_8 = arith.constant 0 : index
    %c0_9 = arith.constant 0 : index
    %3 = vector.load %arg2[%c0_6, %c0_7, %c1, %c0_8, %c0_9] : memref<1x1x4x48x64xbf16, #tpu.memory_space<vmem>>, vector<1x1x1x32x64xbf16>
    %4 = vector.shape_cast %3 : vector<1x1x1x32x64xbf16> to vector<32x64xbf16>
    %c0_10 = arith.constant 0 : index
    %c64 = arith.constant 64 : index
    %5 = vector.load %arg6[%c0_10, %c64] : memref<32x576xbf16, #tpu.memory_space<vmem>>, vector<32x64xbf16>
    tpu.vector_store %arg6[%c0_10, %c64], %4 {strides = array<i32>} : memref<32x576xbf16, #tpu.memory_space<vmem>>, vector<32x64xbf16>,
    %c0_11 = arith.constant 0 : index
    %c0_12 = arith.constant 0 : index
    %c0_13 = arith.constant 0 : index
    %c1_14 = arith.constant 1 : index
    %c0_15 = arith.constant 0 : index
    %6 = vector.load %arg2[%c0_11, %c0_12, %c0_13, %c1_14, %c0_15] : memref<1x1x4x48x64xbf16, #tpu.memory_space<vmem>>, vector<1x1x1x32x64xbf16>
    %7 = vector.shape_cast %6 : vector<1x1x1x32x64xbf16> to vector<32x64xbf16>
    %c0_16 = arith.constant 0 : index
    %c128 = arith.constant 128 : index
    %8 = vector.load %arg6[%c0_16, %c128] : memref<32x576xbf16, #tpu.memory_space<vmem>>, vector<32x64xbf16>
    tpu.vector_store %arg6[%c0_16, %c128], %7 {strides = array<i32>} : memref<32x576xbf16, #tpu.memory_space<vmem>>, vector<32x64xbf16>,
    %c0_17 = arith.constant 0 : index
    %c0_18 = arith.constant 0 : index
    %c2 = arith.constant 2 : index
    %c0_19 = arith.constant 0 : index
    %c0_20 = arith.constant 0 : index
    %9 = vector.load %arg2[%c0_17, %c0_18, %c2, %c0_19, %c0_20] : memref<1x1x4x48x64xbf16, #tpu.memory_space<vmem>>, vector<1x1x1x32x64xbf16>
    %10 = vector.shape_cast %9 : vector<1x1x1x32x64xbf16> to vector<32x64xbf16>
    %c0_21 = arith.constant 0 : index
    %c192 = arith.constant 192 : index
    %11 = vector.load %arg6[%c0_21, %c192] : memref<32x576xbf16, #tpu.memory_space<vmem>>, vector<32x64xbf16>
    tpu.vector_store %arg6[%c0_21, %c192], %10 {strides = array<i32>} : memref<32x576xbf16, #tpu.memory_space<vmem>>, vector<32x64xbf16>,
    %c0_22 = arith.constant 0 : index
    %c0_23 = arith.constant 0 : index
    %c3 = arith.constant 3 : index
    %c0_24 = arith.constant 0 : index
    %c0_25 = arith.constant 0 : index
    %12 = vector.load %arg2[%c0_22, %c0_23, %c3, %c0_24, %c0_25] : memref<1x1x4x48x64xbf16, #tpu.memory_space<vmem>>, vector<1x1x1x32x64xbf16>
    %13 = vector.shape_cast %12 : vector<1x1x1x32x64xbf16> to vector<32x64xbf16>
    %c0_26 = arith.constant 0 : index
    %c256 = arith.constant 256 : index
    %14 = vector.load %arg6[%c0_26, %c256] : memref<32x576xbf16, #tpu.memory_space<vmem>>, vector<32x64xbf16>
    tpu.vector_store %arg6[%c0_26, %c256], %13 {strides = array<i32>} : memref<32x576xbf16, #tpu.memory_space<vmem>>, vector<32x64xbf16>,
    %c0_27 = arith.constant 0 : index
    %c0_28 = arith.constant 0 : index
    %c2_29 = arith.constant 2 : index
    %c1_30 = arith.constant 1 : index
    %c0_31 = arith.constant 0 : index
    %15 = vector.load %arg2[%c0_27, %c0_28, %c2_29, %c1_30, %c0_31] : memref<1x1x4x48x64xbf16, #tpu.memory_space<vmem>>, vector<1x1x1x32x64xbf16>
    %16 = vector.shape_cast %15 : vector<1x1x1x32x64xbf16> to vector<32x64xbf16>
    %c0_32 = arith.constant 0 : index
    %c320 = arith.constant 320 : index
    %17 = vector.load %arg6[%c0_32, %c320] : memref<32x576xbf16, #tpu.memory_space<vmem>>, vector<32x64xbf16>
    tpu.vector_store %arg6[%c0_32, %c320], %16 {strides = array<i32>} : memref<32x576xbf16, #tpu.memory_space<vmem>>, vector<32x64xbf16>,
    %c0_33 = arith.constant 0 : index
    %c0_34 = arith.constant 0 : index
    %c0_35 = arith.constant 0 : index
    %c8 = arith.constant 8 : index
    %c0_36 = arith.constant 0 : index
    %18 = vector.load %arg2[%c0_33, %c0_34, %c0_35, %c8, %c0_36] : memref<1x1x4x48x64xbf16, #tpu.memory_space<vmem>>, vector<1x1x1x32x64xbf16>
    %19 = vector.shape_cast %18 : vector<1x1x1x32x64xbf16> to vector<32x64xbf16>
    %c0_37 = arith.constant 0 : index
    %c384 = arith.constant 384 : index
    %20 = vector.load %arg6[%c0_37, %c384] : memref<32x576xbf16, #tpu.memory_space<vmem>>, vector<32x64xbf16>
    tpu.vector_store %arg6[%c0_37, %c384], %19 {strides = array<i32>} : memref<32x576xbf16, #tpu.memory_space<vmem>>, vector<32x64xbf16>,
    %c0_38 = arith.constant 0 : index
    %c0_39 = arith.constant 0 : index
    %c1_40 = arith.constant 1 : index
    %c8_41 = arith.constant 8 : index
    %c0_42 = arith.constant 0 : index
    %21 = vector.load %arg2[%c0_38, %c0_39, %c1_40, %c8_41, %c0_42] : memref<1x1x4x48x64xbf16, #tpu.memory_space<vmem>>, vector<1x1x1x32x64xbf16>
    %22 = vector.shape_cast %21 : vector<1x1x1x32x64xbf16> to vector<32x64xbf16>
    %c0_43 = arith.constant 0 : index
    %c448 = arith.constant 448 : index
    %23 = vector.load %arg6[%c0_43, %c448] : memref<32x576xbf16, #tpu.memory_space<vmem>>, vector<32x64xbf16>
    tpu.vector_store %arg6[%c0_43, %c448], %22 {strides = array<i32>} : memref<32x576xbf16, #tpu.memory_space<vmem>>, vector<32x64xbf16>,
    %c0_44 = arith.constant 0 : index
    %c0_45 = arith.constant 0 : index
    %c0_46 = arith.constant 0 : index
    %c9 = arith.constant 9 : index
    %c0_47 = arith.constant 0 : index
    %24 = vector.load %arg2[%c0_44, %c0_45, %c0_46, %c9, %c0_47] : memref<1x1x4x48x64xbf16, #tpu.memory_space<vmem>>, vector<1x1x1x32x64xbf16>
    %25 = vector.shape_cast %24 : vector<1x1x1x32x64xbf16> to vector<32x64xbf16>
    %c0_48 = arith.constant 0 : index
    %c512 = arith.constant 512 : index
    %26 = vector.load %arg6[%c0_48, %c512] : memref<32x576xbf16, #tpu.memory_space<vmem>>, vector<32x64xbf16>
    tpu.vector_store %arg6[%c0_48, %c512], %25 {strides = array<i32>} : memref<32x576xbf16, #tpu.memory_space<vmem>>, vector<32x64xbf16>,
    %c0_49 = arith.constant 0 : index
    %c0_50 = arith.constant 0 : index
    %27 = vector.load %arg6[%c0_49, %c0_50] : memref<32x576xbf16, #tpu.memory_space<vmem>>, vector<32x576xbf16>
    %c0_51 = arith.constant 0 : index
    %c0_52 = arith.constant 0 : index
    %28 = vector.load %arg3[%c0_51, %c0_52] : memref<576x128xbf16, #tpu.memory_space<vmem>>, vector<576x128xbf16>
    %cst = arith.constant dense<0.000000e+00> : vector<32x128xf32>
    %29 = tpu.matmul %27, %28, %cst {dimension_numbers = #tpu.dot_dimension_numbers<[1], [0], [0], [1], [0, 0, 1, 1], [], []>} : vector<32x576xbf16>, vector<576x128xbf16>, vector<32x128xf32> -> vector<32x128xf32>
    %c0_53 = arith.constant 0 : index
    %c0_54 = arith.constant 0 : index
    %30 = vector.load %arg4[%c0_53, %c0_54] : memref<1x128xf32, #tpu.memory_space<vmem>>, vector<1x128xf32>
    %31 = vector.broadcast %30 : vector<1x128xf32> to vector<32x128xf32>
    %32 = arith.addf %29, %31 : vector<32x128xf32>
    %cst_55 = arith.constant 0.000000e+00 : f32
    %33 = vector.broadcast %cst_55 : f32 to vector<32x128xf32>
    %34 = arith.maximumf %32, %33 : vector<32x128xf32>
    %35 = arith.truncf %34 : vector<32x128xf32> to vector<32x128xbf16>
    %c0_56 = arith.constant 0 : index
    %c0_57 = arith.constant 0 : index
    %c0_58 = arith.constant 0 : index
    %36 = vector.load %arg5[%c0_56, %c0_57, %c0_58] : memref<1x32x128xbf16, #tpu.memory_space<vmem>>, vector<1x32x128xbf16>
    %37 = vector.shape_cast %36 : vector<1x32x128xbf16> to vector<32x128xbf16>
    %38 = vector.shape_cast %35 : vector<32x128xbf16> to vector<1x32x128xbf16>
    tpu.vector_store %arg5[%c0_56, %c0_57, %c0_58], %38 {strides = array<i32>} : memref<1x32x128xbf16, #tpu.memory_space<vmem>>, vector<1x32x128xbf16>,
    return
  }
  func.func @transform_0(%arg0: i32, %arg1: i32) -> (i32, i32, i32, i32, i32) {
    %c0_i32 = arith.constant 0 : i32
    %c0_i32_0 = arith.constant 0 : i32
    %c0_i32_1 = arith.constant 0 : i32
    %c0_i32_2 = arith.constant 0 : i32
    return %arg0, %arg1, %c0_i32, %c0_i32_0, %c0_i32_1 : i32, i32, i32, i32, i32
  }
  func.func @transform_1(%arg0: i32, %arg1: i32) -> (i32, i32) {
    %c0_i32 = arith.constant 0 : i32
    %c0_i32_0 = arith.constant 0 : i32
    %c0_i32_1 = arith.constant 0 : i32
    return %c0_i32, %c0_i32_0 : i32, i32
  }
  func.func @transform_2(%arg0: i32, %arg1: i32) -> (i32, i32) {
    %c0_i32 = arith.constant 0 : i32
    %c0_i32_0 = arith.constant 0 : i32
    %c0_i32_1 = arith.constant 0 : i32
    return %c0_i32, %c0_i32_0 : i32, i32
  }
  func.func @transform_3(%arg0: i32, %arg1: i32) -> (i32, i32, i32) {
    %c0_i32 = arith.constant 0 : i32
    %c0_i32_0 = arith.constant 0 : i32
    return %arg0, %arg1, %c0_i32 : i32, i32, i32
  }
}

module attributes {stable_mosaic.version = 11 : i64} {
  func.func @kernel(%arg0: i32, %arg1: i32, %arg2: memref<1x1x4x32x64xbf16, #tpu.memory_space<vmem>>, %arg3: memref<576x64xbf16, #tpu.memory_space<vmem>>, %arg4: memref<1x64xf32, #tpu.memory_space<vmem>>, %arg5: memref<64x128xbf16, #tpu.memory_space<vmem>>, %arg6: memref<1x128xf32, #tpu.memory_space<vmem>>, %arg7: memref<1x16x128xf32, #tpu.memory_space<vmem>>, %arg8: memref<16x576xbf16, #tpu.memory_space<vmem>>) attributes {dimension_semantics = [#tpu.dimension_semantics<parallel>, #tpu.dimension_semantics<parallel>], iteration_bounds = array<i64: 2, 1>, scalar_prefetch = 0 : i64, scratch_operands = 1 : i64, tpu.core_type = #tpu.core_type<tc>, window_params = [{transform_indices = @transform_0, window_bounds = array<i64: 1, 1, 4, 32, 64>}, {pipeline_mode = #tpu.pipeline_mode<synchronous>, transform_indices = @transform_1, window_bounds = array<i64: 576, 64>}, {pipeline_mode = #tpu.pipeline_mode<synchronous>, transform_indices = @transform_2, window_bounds = array<i64: 1, 64>}, {pipeline_mode = #tpu.pipeline_mode<synchronous>, transform_indices = @transform_3, window_bounds = array<i64: 64, 128>}, {pipeline_mode = #tpu.pipeline_mode<synchronous>, transform_indices = @transform_4, window_bounds = array<i64: 1, 128>}, {transform_indices = @transform_5, window_bounds = array<i64: 1, 16, 128>}]} {
    %c0 = arith.constant 0 : index
    %c0_0 = arith.constant 0 : index
    %c0_1 = arith.constant 0 : index
    %c0_2 = arith.constant 0 : index
    %c0_3 = arith.constant 0 : index
    %0 = vector.load %arg2[%c0, %c0_0, %c0_1, %c0_2, %c0_3] : memref<1x1x4x32x64xbf16, #tpu.memory_space<vmem>>, vector<1x1x1x16x64xbf16>
    %1 = vector.shape_cast %0 : vector<1x1x1x16x64xbf16> to vector<16x64xbf16>
    %c0_4 = arith.constant 0 : index
    %c0_5 = arith.constant 0 : index
    %2 = vector.load %arg8[%c0_4, %c0_5] : memref<16x576xbf16, #tpu.memory_space<vmem>>, vector<16x64xbf16>
    tpu.vector_store %arg8[%c0_4, %c0_5], %1 {strides = array<i32>} : memref<16x576xbf16, #tpu.memory_space<vmem>>, vector<16x64xbf16>,
    %c0_6 = arith.constant 0 : index
    %c0_7 = arith.constant 0 : index
    %c1 = arith.constant 1 : index
    %c0_8 = arith.constant 0 : index
    %c0_9 = arith.constant 0 : index
    %3 = vector.load %arg2[%c0_6, %c0_7, %c1, %c0_8, %c0_9] : memref<1x1x4x32x64xbf16, #tpu.memory_space<vmem>>, vector<1x1x1x16x64xbf16>
    %4 = vector.shape_cast %3 : vector<1x1x1x16x64xbf16> to vector<16x64xbf16>
    %c0_10 = arith.constant 0 : index
    %c64 = arith.constant 64 : index
    %5 = vector.load %arg8[%c0_10, %c64] : memref<16x576xbf16, #tpu.memory_space<vmem>>, vector<16x64xbf16>
    tpu.vector_store %arg8[%c0_10, %c64], %4 {strides = array<i32>} : memref<16x576xbf16, #tpu.memory_space<vmem>>, vector<16x64xbf16>,
    %c0_11 = arith.constant 0 : index
    %c0_12 = arith.constant 0 : index
    %c0_13 = arith.constant 0 : index
    %c1_14 = arith.constant 1 : index
    %c0_15 = arith.constant 0 : index
    %6 = vector.load %arg2[%c0_11, %c0_12, %c0_13, %c1_14, %c0_15] : memref<1x1x4x32x64xbf16, #tpu.memory_space<vmem>>, vector<1x1x1x16x64xbf16>
    %7 = vector.shape_cast %6 : vector<1x1x1x16x64xbf16> to vector<16x64xbf16>
    %c0_16 = arith.constant 0 : index
    %c128 = arith.constant 128 : index
    %8 = vector.load %arg8[%c0_16, %c128] : memref<16x576xbf16, #tpu.memory_space<vmem>>, vector<16x64xbf16>
    tpu.vector_store %arg8[%c0_16, %c128], %7 {strides = array<i32>} : memref<16x576xbf16, #tpu.memory_space<vmem>>, vector<16x64xbf16>,
    %c0_17 = arith.constant 0 : index
    %c0_18 = arith.constant 0 : index
    %c2 = arith.constant 2 : index
    %c0_19 = arith.constant 0 : index
    %c0_20 = arith.constant 0 : index
    %9 = vector.load %arg2[%c0_17, %c0_18, %c2, %c0_19, %c0_20] : memref<1x1x4x32x64xbf16, #tpu.memory_space<vmem>>, vector<1x1x1x16x64xbf16>
    %10 = vector.shape_cast %9 : vector<1x1x1x16x64xbf16> to vector<16x64xbf16>
    %c0_21 = arith.constant 0 : index
    %c192 = arith.constant 192 : index
    %11 = vector.load %arg8[%c0_21, %c192] : memref<16x576xbf16, #tpu.memory_space<vmem>>, vector<16x64xbf16>
    tpu.vector_store %arg8[%c0_21, %c192], %10 {strides = array<i32>} : memref<16x576xbf16, #tpu.memory_space<vmem>>, vector<16x64xbf16>,
    %c0_22 = arith.constant 0 : index
    %c0_23 = arith.constant 0 : index
    %c3 = arith.constant 3 : index
    %c0_24 = arith.constant 0 : index
    %c0_25 = arith.constant 0 : index
    %12 = vector.load %arg2[%c0_22, %c0_23, %c3, %c0_24, %c0_25] : memref<1x1x4x32x64xbf16, #tpu.memory_space<vmem>>, vector<1x1x1x16x64xbf16>
    %13 = vector.shape_cast %12 : vector<1x1x1x16x64xbf16> to vector<16x64xbf16>
    %c0_26 = arith.constant 0 : index
    %c256 = arith.constant 256 : index
    %14 = vector.load %arg8[%c0_26, %c256] : memref<16x576xbf16, #tpu.memory_space<vmem>>, vector<16x64xbf16>
    tpu.vector_store %arg8[%c0_26, %c256], %13 {strides = array<i32>} : memref<16x576xbf16, #tpu.memory_space<vmem>>, vector<16x64xbf16>,
    %c0_27 = arith.constant 0 : index
    %c0_28 = arith.constant 0 : index
    %c2_29 = arith.constant 2 : index
    %c1_30 = arith.constant 1 : index
    %c0_31 = arith.constant 0 : index
    %15 = vector.load %arg2[%c0_27, %c0_28, %c2_29, %c1_30, %c0_31] : memref<1x1x4x32x64xbf16, #tpu.memory_space<vmem>>, vector<1x1x1x16x64xbf16>
    %16 = vector.shape_cast %15 : vector<1x1x1x16x64xbf16> to vector<16x64xbf16>
    %c0_32 = arith.constant 0 : index
    %c320 = arith.constant 320 : index
    %17 = vector.load %arg8[%c0_32, %c320] : memref<16x576xbf16, #tpu.memory_space<vmem>>, vector<16x64xbf16>
    tpu.vector_store %arg8[%c0_32, %c320], %16 {strides = array<i32>} : memref<16x576xbf16, #tpu.memory_space<vmem>>, vector<16x64xbf16>,
    %c0_33 = arith.constant 0 : index
    %c0_34 = arith.constant 0 : index
    %c0_35 = arith.constant 0 : index
    %c8 = arith.constant 8 : index
    %c0_36 = arith.constant 0 : index
    %18 = vector.load %arg2[%c0_33, %c0_34, %c0_35, %c8, %c0_36] : memref<1x1x4x32x64xbf16, #tpu.memory_space<vmem>>, vector<1x1x1x16x64xbf16>
    %19 = vector.shape_cast %18 : vector<1x1x1x16x64xbf16> to vector<16x64xbf16>
    %c0_37 = arith.constant 0 : index
    %c384 = arith.constant 384 : index
    %20 = vector.load %arg8[%c0_37, %c384] : memref<16x576xbf16, #tpu.memory_space<vmem>>, vector<16x64xbf16>
    tpu.vector_store %arg8[%c0_37, %c384], %19 {strides = array<i32>} : memref<16x576xbf16, #tpu.memory_space<vmem>>, vector<16x64xbf16>,
    %c0_38 = arith.constant 0 : index
    %c0_39 = arith.constant 0 : index
    %c1_40 = arith.constant 1 : index
    %c8_41 = arith.constant 8 : index
    %c0_42 = arith.constant 0 : index
    %21 = vector.load %arg2[%c0_38, %c0_39, %c1_40, %c8_41, %c0_42] : memref<1x1x4x32x64xbf16, #tpu.memory_space<vmem>>, vector<1x1x1x16x64xbf16>
    %22 = vector.shape_cast %21 : vector<1x1x1x16x64xbf16> to vector<16x64xbf16>
    %c0_43 = arith.constant 0 : index
    %c448 = arith.constant 448 : index
    %23 = vector.load %arg8[%c0_43, %c448] : memref<16x576xbf16, #tpu.memory_space<vmem>>, vector<16x64xbf16>
    tpu.vector_store %arg8[%c0_43, %c448], %22 {strides = array<i32>} : memref<16x576xbf16, #tpu.memory_space<vmem>>, vector<16x64xbf16>,
    %c0_44 = arith.constant 0 : index
    %c0_45 = arith.constant 0 : index
    %c0_46 = arith.constant 0 : index
    %c9 = arith.constant 9 : index
    %c0_47 = arith.constant 0 : index
    %24 = vector.load %arg2[%c0_44, %c0_45, %c0_46, %c9, %c0_47] : memref<1x1x4x32x64xbf16, #tpu.memory_space<vmem>>, vector<1x1x1x16x64xbf16>
    %25 = vector.shape_cast %24 : vector<1x1x1x16x64xbf16> to vector<16x64xbf16>
    %c0_48 = arith.constant 0 : index
    %c512 = arith.constant 512 : index
    %26 = vector.load %arg8[%c0_48, %c512] : memref<16x576xbf16, #tpu.memory_space<vmem>>, vector<16x64xbf16>
    tpu.vector_store %arg8[%c0_48, %c512], %25 {strides = array<i32>} : memref<16x576xbf16, #tpu.memory_space<vmem>>, vector<16x64xbf16>,
    %c0_49 = arith.constant 0 : index
    %c0_50 = arith.constant 0 : index
    %27 = vector.load %arg8[%c0_49, %c0_50] : memref<16x576xbf16, #tpu.memory_space<vmem>>, vector<16x576xbf16>
    %c0_51 = arith.constant 0 : index
    %c0_52 = arith.constant 0 : index
    %28 = vector.load %arg3[%c0_51, %c0_52] : memref<576x64xbf16, #tpu.memory_space<vmem>>, vector<576x64xbf16>
    %cst = arith.constant dense<0.000000e+00> : vector<16x64xf32>
    %29 = tpu.matmul %27, %28, %cst {dimension_numbers = #tpu.dot_dimension_numbers<[1], [0], [0], [1], [0, 0, 1, 1], [], []>} : vector<16x576xbf16>, vector<576x64xbf16>, vector<16x64xf32> -> vector<16x64xf32>
    %c0_53 = arith.constant 0 : index
    %c0_54 = arith.constant 0 : index
    %30 = vector.load %arg4[%c0_53, %c0_54] : memref<1x64xf32, #tpu.memory_space<vmem>>, vector<1x64xf32>
    %31 = vector.broadcast %30 : vector<1x64xf32> to vector<16x64xf32>
    %32 = arith.addf %29, %31 : vector<16x64xf32>
    %cst_55 = arith.constant 0.000000e+00 : f32
    %33 = vector.broadcast %cst_55 : f32 to vector<16x64xf32>
    %34 = arith.maximumf %32, %33 : vector<16x64xf32>
    %35 = arith.truncf %34 : vector<16x64xf32> to vector<16x64xbf16>
    %c0_56 = arith.constant 0 : index
    %c0_57 = arith.constant 0 : index
    %36 = vector.load %arg5[%c0_56, %c0_57] : memref<64x128xbf16, #tpu.memory_space<vmem>>, vector<64x128xbf16>
    %cst_58 = arith.constant dense<0.000000e+00> : vector<16x128xf32>
    %37 = tpu.matmul %35, %36, %cst_58 {dimension_numbers = #tpu.dot_dimension_numbers<[1], [0], [0], [1], [0, 0, 1, 1], [], []>} : vector<16x64xbf16>, vector<64x128xbf16>, vector<16x128xf32> -> vector<16x128xf32>
    %c0_59 = arith.constant 0 : index
    %c0_60 = arith.constant 0 : index
    %38 = vector.load %arg6[%c0_59, %c0_60] : memref<1x128xf32, #tpu.memory_space<vmem>>, vector<1x128xf32>
    %39 = vector.broadcast %38 : vector<1x128xf32> to vector<16x128xf32>
    %40 = arith.addf %37, %39 : vector<16x128xf32>
    %cst_61 = arith.constant 0.000000e+00 : f32
    %41 = vector.broadcast %cst_61 : f32 to vector<16x128xf32>
    %42 = arith.maximumf %40, %41 : vector<16x128xf32>
    %c0_62 = arith.constant 0 : index
    %c0_63 = arith.constant 0 : index
    %c0_64 = arith.constant 0 : index
    %43 = vector.load %arg7[%c0_62, %c0_63, %c0_64] : memref<1x16x128xf32, #tpu.memory_space<vmem>>, vector<1x16x128xf32>
    %44 = vector.shape_cast %43 : vector<1x16x128xf32> to vector<16x128xf32>
    %45 = vector.shape_cast %42 : vector<16x128xf32> to vector<1x16x128xf32>
    tpu.vector_store %arg7[%c0_62, %c0_63, %c0_64], %45 {strides = array<i32>} : memref<1x16x128xf32, #tpu.memory_space<vmem>>, vector<1x16x128xf32>,
    return
  }
  func.func @transform_0(%arg0: i32, %arg1: i32) -> (i32, i32, i32, i32, i32) {
    %c0_i32 = arith.constant 0 : i32
    %c0_i32_0 = arith.constant 0 : i32
    %c0_i32_1 = arith.constant 0 : i32
    %c0_i32_2 = arith.constant 0 : i32
    return %arg0, %arg1, %c0_i32, %c0_i32_0, %c0_i32_1 : i32, i32, i32, i32, i32
  }
  func.func @transform_1(%arg0: i32, %arg1: i32) -> (i32, i32) {
    %c0_i32 = arith.constant 0 : i32
    %c0_i32_0 = arith.constant 0 : i32
    %c0_i32_1 = arith.constant 0 : i32
    return %c0_i32, %c0_i32_0 : i32, i32
  }
  func.func @transform_2(%arg0: i32, %arg1: i32) -> (i32, i32) {
    %c0_i32 = arith.constant 0 : i32
    %c0_i32_0 = arith.constant 0 : i32
    %c0_i32_1 = arith.constant 0 : i32
    return %c0_i32, %c0_i32_0 : i32, i32
  }
  func.func @transform_3(%arg0: i32, %arg1: i32) -> (i32, i32) {
    %c0_i32 = arith.constant 0 : i32
    %c0_i32_0 = arith.constant 0 : i32
    %c0_i32_1 = arith.constant 0 : i32
    return %c0_i32, %c0_i32_0 : i32, i32
  }
  func.func @transform_4(%arg0: i32, %arg1: i32) -> (i32, i32) {
    %c0_i32 = arith.constant 0 : i32
    %c0_i32_0 = arith.constant 0 : i32
    %c0_i32_1 = arith.constant 0 : i32
    return %c0_i32, %c0_i32_0 : i32, i32
  }
  func.func @transform_5(%arg0: i32, %arg1: i32) -> (i32, i32, i32) {
    %c0_i32 = arith.constant 0 : i32
    %c0_i32_0 = arith.constant 0 : i32
    return %arg0, %arg1, %c0_i32 : i32, i32, i32
  }
}

</mosaic_0001>

<bundles_post_ra>
// kernel: spatial_path.3
= control target key start
LH: loop header
LB: loop body
LE: loop exit
PB: predicated region body
PF: predicated region fallthrough
CT: control target
= control target key end

     0   :  { %s736_s12 = smov 0   ;;  %s738_s13 = smov 0   ;;  %s834_s0 = inlined_call_operand.vmem [shape: bf16[2,64,147], index: 0, kind: input, shape index: {}]   ;;  %s835_s1 = inlined_call_operand.vmem [shape: bf16[147,128], index: 1, kind: input, shape index: {}]   ;;  %s836_s2 = inlined_call_operand.vmem [shape: f32[1,128], index: 2, kind: input, shape index: {}]   ;;  %s837_s3 = inlined_call_operand.vmem [shape: bf16[2,64,128], index: 3, kind: output, shape index: {}]  }
   0x1   :  { %s740_s14 = smov 0  }
   0x2 LB: > { %s25_s15 = sadd.s32 1, %s709_s13  ;;  %p534_p0 = scmp.ge.s32.totalorder %s713_s14, 1  ;;  %s713_s14 = sphi %s740_s14, %s13_s14   ;;  %s709_s13 = sphi %s738_s13, %s839_s13   ;;  %s705_s12 = sphi %s736_s12, %s838_s12  }
   0x3   : > { %p27_p1 = scmp.ge.s32.totalorder %s25_s15, 2  ;;  %p159_p2 = scmp.lt.s32.totalorder %s713_s14, 3 }
   0x5   : > { %s841_s15 = smov (%p27_p1, %s25_s15), 0  ;;  %p160_p3 = pnand %p534_p0, %p159_p2 }
   0x6   : > { %p193_p4 = scmp.lt.s32.totalorder (!%p160_p3), %s705_s12, 1 }
   0x7   : > { %163 = sbr.rel (%p160_p3) target bundleno = 209 (0xd1), region = 32 }
   0xc   : > { %v630_v0 = vld [vmem:[%s835_s1 + $0x38] sm:$0xff]  ;;  %v240_v1 = vld [vmem:[%s835_s1 + $0x48] sm:$0x3]  ;;  %vm351_vm0 = vcmask 1040384   ;;  %vm352_vm1 = vcmask 1041408   ;;  %v629_v3 = vld [vmem:[%s835_s1 + $0x30] sm:$0xff] }
   0xd   : > { %v318_v2 = vunpack.c.l.b16 %v240_v1  ;;  %358 = vmatpush.bf16.msra.mxu0 %v630_v0  ;;  %655 = vmatpush.bf16.msra.mxu2 %v630_v0  ;;  %v715_v4 = vmov 65535   ;;  %s843_s12 = smov (!%p193_p4, %s705_s12), 1  ;;  %v628_v9 = vld [vmem:[%s835_s1 + $0x28] sm:$0xff]  ;;  %v631_v10 = vld [vmem:[%s835_s1 + $0x40] sm:$0xff]  ;;  %vm338_vm2 = vcmask 154624   ;;  %v626_v18 = vld [vmem:[%s835_s1 + $0x18] sm:$0xff] }
   0xe   : > { %v353_v5 = vsel %vm351_vm0, 4294967295, %v715_v4  ;;  %s613_s22 = sshll.u32 %s843_s12, 6  ;;  %v627_v15 = vld [vmem:[%s835_s1 + $0x20] sm:$0xff]  ;;  %v625_v19 = vld [vmem:[%s835_s1 + $0x10] sm:$0xff]  ;;  %v624_v20 = vld [vmem:[%s835_s1 + $0x8] sm:$0xff]  ;;  %s614_s19 = sshll.u32 %s843_s12, 5 }
   0xf   : > { %v328_v6 = vpack.c.b16 %v318_v2, %v318_v2  ;;  %v354_v7 = vsel %vm352_vm1, %v353_v5, 0  ;;  %s772_s27 = scalar_lea.vmem %s834_s0, %s613_s22  ;;  %v623_v24 = vld [vmem:[%s835_s1] sm:$0xff]  ;;  %s819_s22 = scalar_lea.vmem %s837_s3, %s614_s19 }
  0x10   : > { %v617_v11 = vld [vmem:[%s772_s27 + $0x14] sm:$0xf]  ;;  %v551_v12 = vld [vmem:[%s772_s27 + $0x18] sm:$0xf0]  ;;  %v615_v13 = vld [vmem:[%s772_s27 + $0x4] sm:$0xf] }
  0x11   : > { %v356_v8 = vand.u32 %v354_v7, %v328_v6  ;;  %359 = vmatpush.bf16.msra.mxu0 %v629_v3  ;;  %656 = vmatpush.bf16.msra.mxu2 %v629_v3  ;;  %v554_v14 = vor.u32 %v617_v11, %v551_v12  ;;  %v543_v16 = vld [vmem:[%s772_s27 + $0x8] sm:$0xf0]  ;;  %v619_v21 = vld [vmem:[%s772_s27 + $0x24] sm:$0xf]  ;;  %v541_v25 = vld [vmem:[%s772_s27] sm:$0xf] }
  0x12   : > { %v546_v17 = vor.u32 %v615_v13, %v543_v16  ;;  %v559_v22 = vld [vmem:[%s772_s27 + $0x28] sm:$0xf0]  ;;  %v616_v26 = vld [vmem:[%s772_s27 + $0x4] sm:$0xf0]  ;;  %v557_v27 = vld [vmem:[%s772_s27 + $0x20] sm:$0xf] }
  0x13   : > { %663 = vmatpush.bf16.msra.mxu3 %v356_v8  ;;  %393 = vmatpush.bf16.msra.mxu1 %v356_v8  ;;  %v562_v23 = vor.u32 %v619_v21, %v559_v22  ;;  %v620_v28 = vld [vmem:[%s772_s27 + $0x24] sm:$0xf0]  ;;  %v542_v29 = vor.u32 %v616_v26, %v541_v25  ;;  %v621_v31 = vld [vmem:[%s772_s27 + $0x34] sm:$0xf]  ;;  %v567_v32 = vld [vmem:[%s772_s27 + $0x38] sm:$0xf0] }
  0x14   : > { %v558_v30 = vor.u32 %v620_v28, %v557_v27  ;;  %v570_v33 = vor.u32 %v621_v31, %v567_v32  ;;  %v549_v34 = vld [vmem:[%s772_s27 + $0x10] sm:$0xf]  ;;  %v618_v35 = vld [vmem:[%s772_s27 + $0x14] sm:$0xf0]  ;;  %v690_v44 = vld [vmem:[%s836_s2] ss:$0 sm:$0xff] }
  0x15   : > { %360 = vmatpush.bf16.msra.mxu0 %v628_v9  ;;  %657 = vmatpush.bf16.msra.mxu2 %v628_v9  ;;  %v565_v36 = vld [vmem:[%s772_s27 + $0x30] sm:$0xf]  ;;  %v622_v37 = vld [vmem:[%s772_s27 + $0x34] sm:$0xf0]  ;;  %v550_v38 = vor.u32 %v618_v35, %v549_v34 }
  0x16   : > { %v566_v39 = vor.u32 %v622_v37, %v565_v36 }
  0x17   : > { %664 = vmatpush.bf16.msra.mxu3 %v631_v10  ;;  %394 = vmatpush.bf16.msra.mxu1 %v631_v10 }
  0x19   : > { %361 = vmatpush.bf16.msra.mxu0 %v627_v15  ;;  %658 = vmatpush.bf16.msra.mxu2 %v627_v15 }
  0x1a   : > { %608 = vmatmul.msk.bf16.vlgmr.msra.gmra.mxu3 %vm338_vm2, %v554_v14  ;;  %607 = vmatmul.msk.bf16.vlgmr.msra.gmra.mxu1 %vm338_vm2, %v546_v17 }
  0x1d   : > { %362 = vmatpush.bf16.msra.mxu0 %v626_v18  ;;  %659 = vmatpush.bf16.msra.mxu2 %v626_v18 }
  0x21   : > { %363 = vmatpush.bf16.msra.mxu0 %v625_v19  ;;  %660 = vmatpush.bf16.msra.mxu2 %v625_v19 }
  0x25   : > { %364 = vmatpush.bf16.msra.mxu0 %v624_v20  ;;  %661 = vmatpush.bf16.msra.mxu2 %v624_v20 }
  0x29   : > { %365 = vmatpush.bf16.msra.mxu0 %v623_v24  ;;  %662 = vmatpush.bf16.msra.mxu2 %v623_v24 }
  0x2a   : > { %609 = vmatmul.msk.bf16.gmra.mxu3 %vm338_vm2, %v562_v23 }
  0x2c   : > { %366 = vmatmul.bf16.vlgmr.msra.gmra.mxu0 %v542_v29  ;;  %376 = vmatmul.bf16.vlgmr.msra.gmra.mxu2 %v558_v30 }
  0x3a   : > { %610 = vmatmul.msk.bf16.gmra.mxu3 %vm338_vm2, %v570_v33 }
  0x3c   : > { %371 = vmatmul.bf16.gmra.mxu0 %v550_v38  ;;  %381 = vmatmul.bf16.gmra.mxu2 %v566_v39 }
  0x97   : > { %v396_v42 = vpop.f32.mrf.mxu1 }
  0x9d   : > { %v401_v40 = vpop.f32.mrf.mxu3 }
  0x9f   : > { %v398_v49 = vpop.f32.mrf.mxu1 }
  0xa5   : > { %v403_v41 = vpop.f32.mrf.mxu3 }
  0xa9   : > { %v367_v43 = vpop.f32.mrf.mxu0 }
  0xaa   : > { %v368_v46 = vadd.f32 %v690_v44, %v367_v43 }
  0xac   : > { %v397_v50 = vadd.f32 %v396_v42, %v368_v46 }
  0xad   : > { %v406_v45 = vpop.f32.mrf.mxu3 }
  0xae   : > { %v416_v54 = vmax.f32 %v397_v50, 0.0 }
  0xaf   : > { %v377_v47 = vpop.f32.mrf.mxu2 }
  0xb0   : > { %v378_v53 = vadd.f32 %v690_v44, %v377_v47 }
  0xb1   : > { %v369_v48 = vpop.f32.mrf.mxu0 }
  0xb2   : > { %v370_v51 = vadd.f32 %v690_v44, %v369_v48  ;;  %v407_v59 = vadd.f32 %v406_v45, %v378_v53 }
  0xb4   : > { %v399_v52 = vadd.f32 %v398_v49, %v370_v51  ;;  %v420_v63 = vmax.f32 %v407_v59, 0.0 }
  0xb5   : > { %v408_v56 = vpop.f32.mrf.mxu3 }
  0xb6   : > { %v417_v55 = vmax.f32 %v399_v52, 0.0 }
  0xb7   : > { %v379_v58 = vpop.f32.mrf.mxu2 }
  0xb8   : > { %v635_v57 = vpack.c.bf16 %v417_v55, %v416_v54  ;;  %v380_v60 = vadd.f32 %v690_v44, %v379_v58 }
  0xb9   : > { %v372_v61 = vpop.f32.mrf.mxu0 }
  0xba   : > { %636 = vst [vmem:[%s819_s22] sm:$0xff] %v635_v57   ;;  %v409_v62 = vadd.f32 %v408_v56, %v380_v60  ;;  %v373_v1 = vadd.f32 %v690_v44, %v372_v61 }
  0xbc   : > { %v421_v0 = vmax.f32 %v409_v62, 0.0  ;;  %v402_v6 = vadd.f32 %v401_v40, %v373_v1 }
  0xbd   : > { %v411_v3 = vpop.f32.mrf.mxu3 }
  0xbe   : > { %v645_v2 = vpack.c.bf16 %v421_v0, %v420_v63  ;;  %v418_v10 = vmax.f32 %v402_v6, 0.0 }
  0xbf   : > { %v382_v4 = vpop.f32.mrf.mxu2 }
  0xc0   : > { %653 = vst [vmem:[%s819_s22 + $0x10] sm:$0xff] %v645_v2   ;;  %v383_v9 = vadd.f32 %v690_v44, %v382_v4 }
  0xc1   : > { %v374_v5 = vpop.f32.mrf.mxu0 }
  0xc2   : > { %v375_v7 = vadd.f32 %v690_v44, %v374_v5  ;;  %v412_v14 = vadd.f32 %v411_v3, %v383_v9 }
  0xc4   : > { %v404_v8 = vadd.f32 %v403_v41, %v375_v7  ;;  %v422_v18 = vmax.f32 %v412_v14, 0.0 }
  0xc5   : > { %v413_v16 = vpop.f32.mrf.mxu3 }
  0xc6   : > { %v419_v11 = vmax.f32 %v404_v8, 0.0 }
  0xc7   : > { %v384_v13 = vpop.f32.mrf.mxu2 }
  0xc8   : > { %v640_v12 = vpack.c.bf16 %v419_v11, %v418_v10  ;;  %v385_v15 = vadd.f32 %v690_v44, %v384_v13 }
  0xca   : > { %652 = vst [vmem:[%s819_s22 + $0x8] sm:$0xff] %v640_v12   ;;  %v414_v17 = vadd.f32 %v413_v16, %v385_v15 }
  0xcc   : > { %v423_v19 = vmax.f32 %v414_v17, 0.0 }
  0xce   : > { %v650_v20 = vpack.c.bf16 %v423_v19, %v422_v18 }
  0xd0   : > { %654 = vst [vmem:[%s819_s22 + $0x18] sm:$0xff] %v650_v20  }
  0xd1 PF: > { %s13_s14 = sadd.s32 1, %s713_s14   ;;  %s838_s12 = smov %s709_s13 }
  0xd2   : > { %p10_p5 = scmp.ge.s32.totalorder %s13_s14, 4   ;;  %s839_s13 = smov %s841_s15 }
  0xd4   :  { %12 = sbr.rel (!%p10_p5) target bundleno = 2 (0x2), region = 62 }

// kernel: spatial_path.4
= control target key start
LH: loop header
LB: loop body
LE: loop exit
PB: predicated region body
PF: predicated region fallthrough
CT: control target
= control target key end

     0   :  { %s1401_s12 = smov 0   ;;  %s1403_s13 = smov 0   ;;  %s1670_s0 = inlined_call_operand.vmem [shape: bf16[2,1,4,48,64], index: 0, kind: input, shape index: {}]   ;;  %s1671_s1 = inlined_call_operand.vmem [shape: bf16[576,128], index: 1, kind: input, shape index: {}]   ;;  %s1672_s2 = inlined_call_operand.vmem [shape: f32[1,128], index: 2, kind: input, shape index: {}]   ;;  %s1673_s3 = inlined_call_operand.vmem [shape: bf16[2,32,128], index: 3, kind: output, shape index: {}]  }
   0x1   :  { %s1405_s14 = smov 0  }
   0x2 LB: > { %s25_s15 = sadd.s32 1, %s1374_s13  ;;  %p1054_p0 = scmp.ge.s32.totalorder %s1378_s14, 1  ;;  %s1378_s14 = sphi %s1405_s14, %s13_s14   ;;  %s1374_s13 = sphi %s1403_s13, %s1677_s13   ;;  %s1370_s12 = sphi %s1401_s12, %s1676_s12  }
   0x3   : > { %p27_p1 = scmp.ge.s32.totalorder %s25_s15, 2  ;;  %p157_p2 = scmp.lt.s32.totalorder %s1378_s14, 3 }
   0x5   : > { %s1679_s15 = smov (%p27_p1, %s25_s15), 0  ;;  %p158_p3 = pnand %p1054_p0, %p157_p2 }
   0x6   : > { %p189_p4 = scmp.lt.s32.totalorder (!%p158_p3), %s1370_s12, 1  ;;  %s1380_s20 = smov (!%p158_p3), 64  }
   0x7   : > { %161 = sbr.rel (%p158_p3) target bundleno = 331 (0x14b), region = 32 }
   0xc   : > { %s1681_s12 = smov (!%p189_p4, %s1370_s12), 1  ;;  %vm249_vm0 = vsmask.f32 3328  ;;  %vm250_vm1 = vsmask.f32 7440  ;;  %v1301_v22 = vld [vmem:[%s1671_s1 + $0xb8] sm:$0xff] }
   0xd   : > { %s1329_s16 = smul.u32 96, %s1681_s12  ;;  %vm1436_vm2 = vmor %vm249_vm0, %vm250_vm1  ;;  %v1285_v23 = vld [vmem:[%s1671_s1 + $0x38] sm:$0xff]  ;;  %891 = vmatpush.bf16.msra.mxu2 %v1301_v22  ;;  %v1300_v32 = vld [vmem:[%s1671_s1 + $0xb0] sm:$0xff]  ;;  %vm213_vm3 = vcmask 519168   ;;  %vm239_vm4 = vcmask 1043968   ;;  %vm846_vm5 = vcmask 523264  }
   0xe   : > { %v1293_v26 = vld [vmem:[%s1671_s1 + $0x78] sm:$0xff]  ;;  %853 = vmatpush.bf16.msra.mxu0 %v1285_v23  ;;  %v1284_v33 = vld [vmem:[%s1671_s1 + $0x30] sm:$0xff]  ;;  %v1299_v39 = vld [vmem:[%s1671_s1 + $0xa8] sm:$0xff]  ;;  %s1267_s28 = sshll.u32 %s1681_s12, 4 }
   0xf   : > { %s1425_s19 = scalar_lea.vmem %s1670_s0, %s1329_s16  ;;  %872 = vmatpush.bf16.msra.mxu1 %v1293_v26  ;;  %v1292_v34 = vld [vmem:[%s1671_s1 + $0x70] sm:$0xff]  ;;  %v1298_v46 = vld [vmem:[%s1671_s1 + $0xa0] sm:$0xff]  ;;  %v1283_v57 = vld [vmem:[%s1671_s1 + $0x28] sm:$0xff]  ;;  %s206_s4 = scalar_lea.vmem %s1673_s3, %s1267_s28 }
  0x10   : > { %v1062_v0 = vld [vmem:[%s1425_s19 + $0x30] sm:$0xf]  ;;  %v1058_v1 = vld [vmem:[%s1425_s19 + $0x18] sm:$0xf]  ;;  %v1071_v3 = vld [vmem:[%s1425_s19 + $0x34] sm:$0xf] }
  0x11   : > { %313 = vrot.lane.b32.xlu1 %v1062_v0, %s1380_s20  ;;  %227 = vrot.lane.b32.xlu0 %v1058_v1, %s1380_s20  ;;  %v1070_v2 = vld [vmem:[%s1425_s19 + $0x30] sm:$0xf]  ;;  %v353_v6 = vshll.u32 %v1071_v3, 16  ;;  %v357_v7 = vshrl.u32 %v1071_v3, 16  ;;  %v1072_v11 = vld [vmem:[%s1425_s19 + $0x38] sm:$0xf] }
  0x12   : > { %v344_v4 = vshrl.u32 %v1070_v2, 16  ;;  %v347_v5 = vshll.u32 %v1070_v2, 16  ;;  %v1063_v12 = vld [vmem:[%s1425_s19 + $0x34] sm:$0xf]  ;;  %v1059_v13 = vld [vmem:[%s1425_s19 + $0x1c] sm:$0xf]  ;;  %892 = vmatpush.bf16.msra.mxu2 %v1300_v32  ;;  %854 = vmatpush.bf16.msra.mxu0 %v1284_v33 }
  0x13   : > { %v359_v10 = vrot.slane %v357_v7, 4  ;;  %v355_v15 = vrot.slane %v353_v6, 5  ;;  %v363_v19 = vshll.u32 %v1072_v11, 16  ;;  %v1073_v21 = vld [vmem:[%s1425_s19 + $0x3c] sm:$0xf]  ;;  %v367_v29 = vshrl.u32 %v1072_v11, 16  ;;  %873 = vmatpush.bf16.msra.mxu1 %v1292_v34 }
  0x14   : > { %v346_v8 = vrot.slane %v344_v4, 4  ;;  %v349_v9 = vrot.slane %v347_v5, 5  ;;  %v1076_v27 = vld [vmem:[%s1425_s19 + $0x20] sm:$0xf]  ;;  %v1075_v28 = vld [vmem:[%s1425_s19 + $0x1c] sm:$0xf] }
  0x15   : > { %v360_v18 = vor.u32 %v359_v10, %v355_v15  ;;  %v365_v25 = vrot.slane %v363_v19, 5  ;;  %v373_v30 = vshll.u32 %v1073_v21, 16  ;;  %v377_v31 = vshrl.u32 %v1073_v21, 16  ;;  %v1074_v40 = vld [vmem:[%s1425_s19 + $0x40] sm:$0x1]  ;;  %v1291_v58 = vld [vmem:[%s1671_s1 + $0x68] sm:$0xff] }
  0x16   : > { %v350_v14 = vor.u32 %v349_v9, %v346_v8  ;;  %v369_v38 = vrot.slane %v367_v29, 4  ;;  %v1064_v41 = vld [vmem:[%s1425_s19 + $0x38] sm:$0xf]  ;;  %v1061_v42 = vld [vmem:[%s1425_s19 + $0x24] sm:$0xf]  ;;  %v383_v44 = vshll.u32 %v1074_v40, 16  ;;  %893 = vmatpush.bf16.msra.mxu2 %v1299_v39  ;;  %855 = vmatpush.bf16.msra.mxu0 %v1283_v57 }
  0x17   : > { %v361_v24 = vrot.slane %v360_v18, 4  ;;  %v375_v36 = vrot.slane %v373_v30, 5  ;;  %v379_v37 = vrot.slane %v377_v31, 4  ;;  %v1060_v47 = vld [vmem:[%s1425_s19 + $0x20] sm:$0xf]  ;;  %v1297_v59 = vld [vmem:[%s1671_s1 + $0x98] sm:$0xff]  ;;  %874 = vmatpush.bf16.msra.mxu1 %v1291_v58 }
  0x18   : > { %v351_v17 = vrot.slane %v350_v14, 4  ;;  %v370_v45 = vor.u32 %v369_v38, %v365_v25  ;;  %v385_v49 = vrot.slane %v383_v44, 5  ;;  %v1065_v53 = vld [vmem:[%s1425_s19 + $0x3c] sm:$0xf]  ;;  %v1078_v54 = vld [vmem:[%s1425_s19 + $0x28] sm:$0xf] }
  0x19   : > { %315 = vrot.lane.b32.xlu1 %v1063_v12, %s1380_s20  ;;  %229 = vrot.lane.b32.xlu0 %v1059_v13, %s1380_s20  ;;  %v366_v35 = vsel %vm1436_vm2, %v361_v24, %v365_v25  ;;  %v380_v43 = vor.u32 %v379_v37, %v375_v36  ;;  %v1077_v55 = vld [vmem:[%s1425_s19 + $0x24] sm:$0xf]  ;;  %v1066_v56 = vld [vmem:[%s1425_s19 + $0x48] sm:$0xf] }
  0x1a   : > { %v356_v20 = vsel %vm1436_vm2, %v351_v17, %v355_v15  ;;  %v371_v50 = vrot.slane %v370_v45, 4  ;;  %894 = vmatpush.bf16.msra.mxu2 %v1298_v46  ;;  %334 = vst.msk [vmem:[#allocation2 + $0x8] sm:$0xf] %vm213_vm3, %v1066_v56  ;;  %v1309_v60 = vld [vmem:[%s1671_s1 + $0xf8] sm:$0xff]  ;;  %v1282_v61 = vld [vmem:[%s1671_s1 + $0x20] sm:$0xff]  ;;  %v1296_v63 = vld [vmem:[%s1671_s1 + $0x90] sm:$0xff] }
  0x1b   : > { %387 = vrot.lane.b32.xlu2 %v356_v20, %s1380_s20  ;;  %v381_v48 = vrot.slane %v380_v43, 4  ;;  %v1290_v62 = vld [vmem:[%s1671_s1 + $0x60] sm:$0xff]  ;;  %910 = vmatpush.bf16.msra.mxu3 %v1309_v60  ;;  %v1308_v0 = vld [vmem:[%s1671_s1 + $0xf0] sm:$0xff]  ;;  %v1067_v1 = vld [vmem:[%s1425_s19 + $0x4c] sm:$0xf] }
  0x1c   : > { %v376_v52 = vsel %vm1436_vm2, %v371_v50, %v375_v36  ;;  %856 = vmatpush.bf16.msra.mxu0 %v1282_v61  ;;  %875 = vmatpush.bf16.msra.mxu1 %v1290_v62  ;;  %335 = vst.msk [vmem:[#allocation2 + $0x1c] sm:$0xf] %vm213_vm3, %v1067_v1  ;;  %v244_v2 = vld [vmem:[%s1425_s19] sm:$0xf]  ;;  %v245_v5 = vld [vmem:[%s1425_s19 + $0x4] sm:$0xf] }
  0x1d   : > { %v386_v51 = vsel %vm1436_vm2, %v381_v48, %v385_v49  ;;  %v253_v3 = vshrl.u32 %v244_v2, 16  ;;  %v256_v4 = vshll.u32 %v244_v2, 16  ;;  %v262_v8 = vshll.u32 %v245_v5, 16  ;;  %v209_v10 = vld [vmem:[%s1425_s19] sm:$0xf]  ;;  %v1281_v13 = vld [vmem:[%s1671_s1 + $0x18] sm:$0xff] }
  0x1e   : > { %895 = vmatpush.bf16.msra.mxu2 %v1297_v59  ;;  %v266_v9 = vshrl.u32 %v245_v5, 16  ;;  %214 = vst.msk [vmem:[#allocation2] sm:$0xf] %vm213_vm3, %v209_v10  ;;  %v1289_v14 = vld [vmem:[%s1671_s1 + $0x58] sm:$0xff]  ;;  %v1295_v15 = vld [vmem:[%s1671_s1 + $0x88] sm:$0xff]  ;;  %v1280_v20 = vld [vmem:[%s1671_s1 + $0x10] sm:$0xff] }
  0x1f   : > { %911 = vmatpush.bf16.msra.mxu3 %v1308_v0  ;;  %v255_v6 = vrot.slane %v253_v3, 4  ;;  %v258_v7 = vrot.slane %v256_v4, 5  ;;  %v264_v12 = vrot.slane %v262_v8, 5  ;;  %v1307_v19 = vld [vmem:[%s1671_s1 + $0xe8] sm:$0xff]  ;;  %v1288_v21 = vld [vmem:[%s1671_s1 + $0x50] sm:$0xff]  ;;  %v1294_v25 = vld [vmem:[%s1671_s1 + $0x80] sm:$0xff] }
  0x20   : > { %v268_v17 = vrot.slane %v266_v9, 4  ;;  %857 = vmatpush.bf16.msra.mxu0 %v1281_v13  ;;  %876 = vmatpush.bf16.msra.mxu1 %v1289_v14  ;;  %v246_v22 = vld [vmem:[%s1425_s19 + $0x8] sm:$0xf]  ;;  %v1306_v26 = vld [vmem:[%s1671_s1 + $0xe0] sm:$0xff]  ;;  %v1305_v34 = vld [vmem:[%s1671_s1 + $0xd8] sm:$0xff] }
  0x21   : > { %421 = vrot.lane.b32.xlu1 %v1076_v27, %s1380_s20  ;;  %419 = vrot.lane.b32.xlu0 %v1075_v28, %s1380_s20  ;;  %v259_v11 = vor.u32 %v258_v7, %v255_v6  ;;  %v272_v27 = vshll.u32 %v246_v22, 16  ;;  %v210_v30 = vld [vmem:[%s1425_s19 + $0x4] sm:$0xf]  ;;  %v1279_v32 = vld [vmem:[%s1671_s1 + $0x8] sm:$0xff]  ;;  %v276_v39 = vshrl.u32 %v246_v22, 16 }
  0x22   : > { %896 = vmatpush.bf16.msra.mxu2 %v1296_v63  ;;  %v269_v23 = vor.u32 %v268_v17, %v264_v12  ;;  %215 = vst.msk [vmem:[#allocation2 + $0x14] sm:$0xf] %vm213_vm3, %v210_v30  ;;  %v1287_v33 = vld [vmem:[%s1671_s1 + $0x48] sm:$0xff]  ;;  %v1286_v36 = vld [vmem:[%s1671_s1 + $0x40] sm:$0xff]  ;;  %v1304_v38 = vld [vmem:[%s1671_s1 + $0xd0] sm:$0xff] }
  0x23   : > { %389 = vrot.lane.b32.xlu2 %v366_v35, %s1380_s20  ;;  %v260_v18 = vrot.slane %v259_v11, 4  ;;  %912 = vmatpush.bf16.msra.mxu3 %v1307_v19  ;;  %v274_v29 = vrot.slane %v272_v27, 5  ;;  %v1278_v35 = vld [vmem:[%s1671_s1] sm:$0xff]  ;;  %v404_v37 = vld [vmem:[%s1425_s19 + $0x8] sm:$0xf]  ;;  %v278_v46 = vrot.slane %v276_v39, 4 }
  0x24   : > { %v270_v28 = vrot.slane %v269_v23, 4  ;;  %858 = vmatpush.bf16.msra.mxu0 %v1280_v20  ;;  %877 = vmatpush.bf16.msra.mxu1 %v1288_v21  ;;  %408 = vst.msk [vmem:[#allocation2 + $0x20] sm:$0xf] %vm213_vm3, %v404_v37  ;;  %v247_v40 = vld [vmem:[%s1425_s19 + $0xc] sm:$0xf]  ;;  %v1313_v62 = vld [vmem:[%s1671_s1 + $0x118] sm:$0xff] }
  0x25   : > { %v265_v24 = vsel %vm1436_vm2, %v260_v18, %v264_v12  ;;  %v286_v43 = vshrl.u32 %v247_v40, 16  ;;  %v211_v44 = vld [vmem:[%s1425_s19 + $0x8] sm:$0xf]  ;;  %v248_v50 = vld [vmem:[%s1425_s19 + $0x10] sm:$0x1] }
  0x26   : > { %897 = vmatpush.bf16.msra.mxu2 %v1295_v15  ;;  %300 = vst.msk [vmem:[#allocation2 + $0x4] sm:$0xf] %vm213_vm3, %v265_v24  ;;  %v275_v31 = vsel %vm1436_vm2, %v270_v28, %v274_v29  ;;  %v1303_v49 = vld [vmem:[%s1671_s1 + $0xc8] sm:$0xff]  ;;  %v1069_v63 = vld [vmem:[%s1425_s19 + $0x54] sm:$0xf] }
  0x27   : > { %913 = vmatpush.bf16.msra.mxu3 %v1306_v26  ;;  %301 = vst.msk [vmem:[#allocation2 + $0x18] sm:$0xf] %vm213_vm3, %v275_v31  ;;  %v288_v48 = vrot.slane %v286_v43, 4  ;;  %v212_v60 = vld [vmem:[%s1425_s19 + $0xc] sm:$0xf]  ;;  %v1312_v18 = vld [vmem:[%s1671_s1 + $0x110] sm:$0xff] }
  0x28   : > { %859 = vmatpush.bf16.msra.mxu0 %v1279_v32  ;;  %878 = vmatpush.bf16.msra.mxu1 %v1287_v33  ;;  %216 = vst.msk [vmem:[#allocation2 + $0x28] sm:$0xf] %vm213_vm3, %v211_v44  ;;  %v1068_v3 = vld [vmem:[%s1425_s19 + $0x50] sm:$0xf]  ;;  %v435_v4 = vld [vmem:[%s1425_s19 + $0x4] sm:$0xf] }
  0x29   : > { %317 = vrot.lane.b32.xlu1 %v1064_v41, %s1380_s20  ;;  %233 = vrot.lane.b32.xlu0 %v1061_v42, %s1380_s20  ;;  %v403_v41 = vld [vmem:[%s1425_s19 + $0x4] sm:$0xf]  ;;  %v282_v42 = vshll.u32 %v247_v40, 16  ;;  %217 = vst.msk [vmem:[#allocation2 + $0x3c] sm:$0xf] %vm213_vm3, %v212_v60  ;;  %v441_v7 = vshrl.u32 %v435_v4, 16 }
  0x2a   : > { %898 = vmatpush.bf16.msra.mxu2 %v1294_v25  ;;  %407 = vst.msk [vmem:[#allocation2 + $0xc] sm:$0xf] %vm213_vm3, %v403_v41  ;;  %v436_v5 = vld [vmem:[%s1425_s19 + $0x8] sm:$0xf]  ;;  %v437_v6 = vld [vmem:[%s1425_s19 + $0xc] sm:$0xf] }
  0x2b   : > { %231 = vrot.lane.b32.xlu2 %v1060_v47, %s1380_s20  ;;  %914 = vmatpush.bf16.msra.mxu3 %v1305_v34  ;;  %v284_v47 = vrot.slane %v282_v42, 5  ;;  %337 = vst.msk [vmem:[#allocation2 + $0x44] sm:$0xf] %vm213_vm3, %v1069_v63  ;;  %v444_v8 = vshll.u32 %v435_v4, 16  ;;  %v450_v11 = vshll.u32 %v436_v5, 16  ;;  %v454_v12 = vshrl.u32 %v436_v5, 16 }
  0x2c   : > { %860 = vmatpush.bf16.msra.mxu0 %v1278_v35  ;;  %879 = vmatpush.bf16.msra.mxu1 %v1286_v36  ;;  %v443_v14 = vrot.slane %v441_v7, 4  ;;  %v460_v17 = vshll.u32 %v437_v6, 16  ;;  %336 = vst.msk [vmem:[#allocation2 + $0x30] sm:$0xf] %vm213_vm3, %v1068_v3  ;;  %v405_v19 = vld [vmem:[%s1425_s19 + $0xc] sm:$0xf] }
  0x2d   : > { %v446_v15 = vrot.slane %v444_v8, 5  ;;  %v452_v20 = vrot.slane %v450_v11, 5  ;;  %409 = vst.msk [vmem:[#allocation2 + $0x34] sm:$0xf] %vm213_vm3, %v405_v19  ;;  %v406_v21 = vld [vmem:[%s1425_s19 + $0x10] sm:$0xf] }
  0x2e   : > { %v456_v23 = vrot.slane %v454_v12, 4  ;;  %410 = vst.msk [vmem:[#allocation2 + $0x48] sm:$0xf] %vm213_vm3, %v406_v21  ;;  %v462_v24 = vrot.slane %v460_v17, 5  ;;  %v464_v25 = vshrl.u32 %v437_v6, 16  ;;  %v1311_v42 = vld [vmem:[%s1671_s1 + $0x108] sm:$0xff] }
  0x2f   : > { %915 = vmatpush.bf16.msra.mxu3 %v1304_v38  ;;  %v447_v22 = vor.u32 %v446_v15, %v443_v14  ;;  %v438_v26 = vld [vmem:[%s1425_s19 + $0x10] sm:$0xf] }
  0x30   : > { %933 = vmatpush.bf16.msrb.mxu0 %v1313_v62  ;;  %1325 = vmatpush.bf16.msrb.mxu1 %v1313_v62  ;;  %v457_v28 = vor.u32 %v456_v23, %v452_v20  ;;  %v470_v30 = vshll.u32 %v438_v26, 16  ;;  %v474_v31 = vshrl.u32 %v438_v26, 16  ;;  %v466_v34 = vrot.slane %v464_v25, 4 }
  0x31   : > { %393 = vrot.lane.b32.xlu1 %v386_v51, %s1380_s20  ;;  %391 = vrot.lane.b32.xlu0 %v376_v52, %s1380_s20  ;;  %v279_v51 = vor.u32 %v278_v46, %v274_v29  ;;  %v289_v52 = vor.u32 %v288_v48, %v284_v47  ;;  %v448_v27 = vrot.slane %v447_v22, 4  ;;  %v439_v29 = vld [vmem:[%s1425_s19 + $0x14] sm:$0x1]  ;;  %v1310_v46 = vld [vmem:[%s1671_s1 + $0x100] sm:$0xff] }
  0x32   : > { %v458_v36 = vrot.slane %v457_v28, 4  ;;  %v472_v37 = vrot.slane %v470_v30, 5  ;;  %v480_v38 = vshll.u32 %v439_v29, 16  ;;  %v467_v40 = vor.u32 %v466_v34, %v462_v24  ;;  %v1355_v30 = vld [vmem:[%s1672_s2] ss:$0 sm:$0xff] }
  0x33   : > { %319 = vrot.lane.b32.xlu2 %v1065_v53, %s1380_s20  ;;  %v292_v53 = vshll.u32 %v248_v50, 16  ;;  %916 = vmatpush.bf16.msra.mxu3 %v1303_v49  ;;  %v290_v56 = vrot.slane %v289_v52, 4  ;;  %v453_v35 = vsel %vm1436_vm2, %v448_v27, %v452_v20  ;;  %v476_v41 = vrot.slane %v474_v31, 4 }
  0x34   : > { %934 = vmatpush.bf16.msrb.mxu0 %v1312_v18  ;;  %1326 = vmatpush.bf16.msrb.mxu1 %v1312_v18  ;;  %v463_v43 = vsel %vm1436_vm2, %v458_v36, %v462_v24  ;;  %488 = vst.msk [vmem:[#allocation2 + $0x10] sm:$0xf] %vm213_vm3, %v453_v35  ;;  %v468_v44 = vrot.slane %v467_v40, 4 }
  0x35   : > { %v294_v57 = vrot.slane %v292_v53, 5  ;;  %489 = vst.msk [vmem:[#allocation2 + $0x24] sm:$0xf] %vm213_vm3, %v463_v43 }
  0x36   : > { %v473_v48 = vsel %vm1436_vm2, %v468_v44, %v472_v37 }
  0x37   : > { %v295_v59 = vsel %vm1436_vm2, %v290_v56, %v294_v57  ;;  %490 = vst.msk [vmem:[#allocation2 + $0x38] sm:$0xf] %vm213_vm3, %v473_v48 }
  0x38   : > { %303 = vst.msk [vmem:[#allocation2 + $0x40] sm:$0xf] %vm213_vm3, %v295_v59  ;;  %935 = vmatpush.bf16.msrb.mxu0 %v1311_v42  ;;  %1327 = vmatpush.bf16.msrb.mxu1 %v1311_v42 }
  0x39   : > { %425 = vrot.lane.b32.xlu0 %v1078_v54, %s1380_s20  ;;  %v1302_v54 = vld [vmem:[%s1671_s1 + $0xc0] sm:$0xff] }
  0x3a   : > { %917 = vmatpush.bf16.msra.mxu3 %v1302_v54 }
  0x3b   : > { %423 = vrot.lane.b32.xlu2 %v1077_v55, %s1380_s20  ;;  %v280_v55 = vrot.slane %v279_v51, 4  ;;  %v1097_v14 = vld [vmem:[#allocation2 + $0x10] sm:$0xf] }
  0x3c   : > { %936 = vmatpush.bf16.msrb.mxu0 %v1310_v46  ;;  %1328 = vmatpush.bf16.msrb.mxu1 %v1310_v46  ;;  %v1272_v15 = vld [vmem:[#allocation2 + $0x20] sm:$0xf0] }
  0x3d   : > { %v285_v58 = vsel %vm1436_vm2, %v280_v55, %v284_v47  ;;  %v482_v47 = vrot.slane %v480_v38, 5  ;;  %v1098_v20 = vor.u32 %v1272_v15, %v1097_v14 }
  0x3e   : > { %302 = vst.msk [vmem:[#allocation2 + $0x2c] sm:$0xf] %vm213_vm3, %v285_v58  ;;  %v1117_v12 = vld [vmem:[#allocation2 + $0x38] sm:$0xf] }
  0x75   : > { %v388_v45 = vpop.permute.xlu2 %387 }
  0x76   : > { %399 = vst.msk [vmem:[#allocation2 + $0x8] sm:$0xf] %vm239_vm4, %v388_v45  ;;  %v477_v45 = vor.u32 %v476_v41, %v472_v37 }
  0x78   : > { %v478_v49 = vrot.slane %v477_v45, 4 }
  0x7a   : > { %v483_v57 = vsel %vm1436_vm2, %v478_v49, %v482_v47 }
  0x7b   : > { %491 = vst.msk [vmem:[#allocation2 + $0x4c] sm:$0xf] %vm213_vm3, %v483_v57 }
  0x7d   : > { %v390_v61 = vpop.permute.xlu2 %389  ;;  %v1089_v0 = vld [vmem:[#allocation2 + $0x8] sm:$0xf] }
  0x7e   : > { %400 = vst.msk [vmem:[#allocation2 + $0x1c] sm:$0xf] %vm239_vm4, %v390_v61 }
  0x83   : > { %v314_v1 = vpop.permute.xlu1 %313  ;;  %v228_v2 = vpop.permute.xlu0 %227 }
  0x84   : > { %325 = vst.msk [vmem:[#allocation2 + $0x4] sm:$0xf] %vm239_vm4, %v314_v1 }
  0x85   : > { %240 = vst.msk [vmem:[#allocation2] sm:$0xf] %vm239_vm4, %v228_v2  ;;  %v1271_v9 = vld [vmem:[#allocation2 + $0x18] sm:$0xf0]  ;;  %v232_v10 = vpop.permute.xlu2 %231 }
  0x86   : > { %v1090_v13 = vor.u32 %v1271_v9, %v1089_v0  ;;  %242 = vst.msk [vmem:[#allocation2 + $0x28] sm:$0xf] %vm239_vm4, %v232_v10 }
  0x88   : > { %899 = vmatmul.bf16.vlgmr.msra.gmra.mxu2 %v1090_v13  ;;  %v1277_v13 = vld [vmem:[#allocation2 + $0x48] sm:$0xf0] }
  0x89   : > { %v1118_v18 = vor.u32 %v1277_v13, %v1117_v12 }
  0x8b   : > { %v316_v32 = vpop.permute.xlu1 %315  ;;  %v230_v33 = vpop.permute.xlu0 %229  ;;  %v1268_v52 = vld [vmem:[#allocation2 + $0x4] sm:$0xf] }
  0x8c   : > { %326 = vst.msk [vmem:[#allocation2 + $0x18] sm:$0xf] %vm239_vm4, %v316_v32  ;;  %v1081_v54 = vld [vmem:[#allocation2] sm:$0xf] }
  0x8d   : > { %241 = vst.msk [vmem:[#allocation2 + $0x14] sm:$0xf] %vm239_vm4, %v230_v33  ;;  %v320_v39 = vpop.permute.xlu2 %319  ;;  %v1101_v1 = vld [vmem:[#allocation2 + $0x28] sm:$0xf] }
  0x8e   : > { %328 = vst.msk [vmem:[#allocation2 + $0x40] sm:$0xf] %vm239_vm4, %v320_v39 }
  0x93   : > { %v422_v50 = vpop.permute.xlu1 %421  ;;  %v420_v51 = vpop.permute.xlu0 %419  ;;  %v1083_v53 = vld [vmem:[#allocation2 + $0x14] sm:$0xf0] }
  0x94   : > { %432 = vst.msk [vmem:[#allocation2 + $0x20] sm:$0xf] %vm239_vm4, %v422_v50  ;;  %v1270_v55 = vld [vmem:[#allocation2 + $0x10] sm:$0xf0]  ;;  %v1086_v56 = vor.u32 %v1268_v52, %v1083_v53 }
  0x95   : > { %431 = vst.msk [vmem:[#allocation2 + $0xc] sm:$0xf] %vm239_vm4, %v420_v51  ;;  %v1082_v58 = vor.u32 %v1270_v55, %v1081_v54  ;;  %v424_v59 = vpop.permute.xlu2 %423  ;;  %v1103_v0 = vld [vmem:[#allocation2 + $0x3c] sm:$0xf0] }
  0x96   : > { %880 = vmatmul.bf16.vlgmr.msra.gmra.mxu1 %v1086_v56  ;;  %433 = vst.msk [vmem:[#allocation2 + $0x34] sm:$0xf] %vm239_vm4, %v424_v59 }
  0x97   : > { %861 = vmatmul.bf16.vlgmr.msra.gmra.mxu0 %v1082_v58 }
  0x9b   : > { %v318_v60 = vpop.permute.xlu1 %317  ;;  %v234_v61 = vpop.permute.xlu0 %233  ;;  %v1091_v62 = vld [vmem:[#allocation2 + $0x1c] sm:$0xf0] }
  0x9c   : > { %327 = vst.msk [vmem:[#allocation2 + $0x2c] sm:$0xf] %vm239_vm4, %v318_v60  ;;  %v1269_v63 = vld [vmem:[#allocation2 + $0xc] sm:$0xf] }
  0x9d   : > { %243 = vst.msk [vmem:[#allocation2 + $0x3c] sm:$0xf] %vm239_vm4, %v234_v61  ;;  %v1094_v16 = vor.u32 %v1269_v63, %v1091_v62  ;;  %v1274_v17 = vld [vmem:[#allocation2 + $0x34] sm:$0xf] }
  0x9f   : > { %918 = vmatmul.bf16.vlgmr.msra.gmra.mxu3 %v1094_v16 }
  0xa3   : > { %v394_v2 = vpop.permute.xlu1 %393  ;;  %v392_v3 = vpop.permute.xlu0 %391  ;;  %v1273_v4 = vld [vmem:[#allocation2 + $0x2c] sm:$0xf] }
  0xa4   : > { %402 = vst.msk [vmem:[#allocation2 + $0x44] sm:$0xf] %vm239_vm4, %v394_v2  ;;  %v1275_v5 = vld [vmem:[#allocation2 + $0x38] sm:$0xf0]  ;;  %v1106_v6 = vor.u32 %v1273_v4, %v1103_v0 }
  0xa5   : > { %401 = vst.msk [vmem:[#allocation2 + $0x30] sm:$0xf] %vm239_vm4, %v392_v3  ;;  %v1102_v7 = vor.u32 %v1275_v5, %v1101_v1 }
  0xa6   : > { %885 = vmatmul.bf16.gmra.mxu1 %v1106_v6 }
  0xa7   : > { %866 = vmatmul.bf16.gmra.mxu0 %v1102_v7 }
  0xab   : > { %v426_v8 = vpop.permute.xlu0 %425  ;;  %v1276_v9 = vld [vmem:[#allocation2 + $0x40] sm:$0xf0] }
  0xac   : > { %434 = vst.msk [vmem:[#allocation2 + $0x48] sm:$0xf] %vm239_vm4, %v426_v8  ;;  %v1109_v10 = vld [vmem:[#allocation2 + $0x30] sm:$0xf] }
  0xad   : > { %v1110_v11 = vor.u32 %v1276_v9, %v1109_v10 }
  0xaf   : > { %904 = vmatmul.bf16.gmra.mxu2 %v1110_v11 }
  0xb3   : > { %v1111_v19 = vld [vmem:[#allocation2 + $0x44] sm:$0xf0] }
  0xb4   : > { %v1114_v21 = vor.u32 %v1274_v17, %v1111_v19 }
  0xb6   : > { %923 = vmatmul.bf16.gmra.mxu3 %v1114_v21  ;;  %1264 = vmatmul.msk.bf16.vlgmr.msrb.gmra.mxu1 %vm846_vm5, %v1118_v18 }
  0xb7   : > { %1263 = vmatmul.msk.bf16.vlgmr.msrb.gmra.mxu0 %vm846_vm5, %v1098_v20 }
 0x10b   : > { %v900_v26 = vpop.f32.mrf.mxu2 }
 0x113   : > { %v881_v22 = vpop.f32.mrf.mxu1  ;;  %v902_v31 = vpop.f32.mrf.mxu2 }
 0x114   : > { %v862_v23 = vpop.f32.mrf.mxu0 }
 0x115   : > { %v863_v33 = vadd.f32 %v1355_v30, %v862_v23 }
 0x117   : > { %v882_v37 = vadd.f32 %v881_v22, %v863_v33 }
 0x119   : > { %v901_v42 = vadd.f32 %v900_v26, %v882_v37 }
 0x11b   : > { %v883_v24 = vpop.f32.mrf.mxu1 }
 0x11c   : > { %v864_v25 = vpop.f32.mrf.mxu0 }
 0x11d   : > { %v865_v35 = vadd.f32 %v1355_v30, %v864_v25 }
 0x11f   : > { %v884_v40 = vadd.f32 %v883_v24, %v865_v35 }
 0x121   : > { %v903_v44 = vadd.f32 %v902_v31, %v884_v40 }
 0x122   : > { %v919_v29 = vpop.f32.mrf.mxu3 }
 0x123   : > { %v886_v28 = vpop.f32.mrf.mxu1  ;;  %v920_v43 = vadd.f32 %v919_v29, %v901_v42 }
 0x124   : > { %v867_v27 = vpop.f32.mrf.mxu0 }
 0x125   : > { %v868_v41 = vadd.f32 %v1355_v30, %v867_v27 }
 0x127   : > { %v887_v47 = vadd.f32 %v886_v28, %v868_v41 }
 0x12a   : > { %v921_v36 = vpop.f32.mrf.mxu3 }
 0x12b   : > { %v888_v34 = vpop.f32.mrf.mxu1  ;;  %v922_v49 = vadd.f32 %v921_v36, %v903_v44 }
 0x12c   : > { %v869_v32 = vpop.f32.mrf.mxu0 }
 0x12d   : > { %v870_v48 = vadd.f32 %v1355_v30, %v869_v32 }
 0x12f   : > { %v889_v55 = vadd.f32 %v888_v34, %v870_v48 }
 0x132   : > { %v905_v38 = vpop.f32.mrf.mxu2 }
 0x133   : > { %v943_v45 = vpop.f32.mrf.mxu1  ;;  %v906_v51 = vadd.f32 %v905_v38, %v887_v47 }
 0x134   : > { %v938_v39 = vpop.f32.mrf.mxu0 }
 0x135   : > { %v939_v50 = vadd.f32 %v938_v39, %v920_v43 }
 0x137   : > { %v948_v57 = vmax.f32 %v939_v50, 0.0 }
 0x139   : > { %v924_v46 = vpop.f32.mrf.mxu3 }
 0x13a   : > { %v907_v53 = vpop.f32.mrf.mxu2  ;;  %v925_v56 = vadd.f32 %v924_v46, %v906_v51 }
 0x13b   : > { %v908_v59 = vadd.f32 %v907_v53, %v889_v55  ;;  %v945_v16 = vpop.f32.mrf.mxu1 }
 0x13c   : > { %v940_v52 = vpop.f32.mrf.mxu0  ;;  %v944_v62 = vadd.f32 %v943_v45, %v925_v56 }
 0x13d   : > { %v941_v54 = vadd.f32 %v940_v52, %v922_v49 }
 0x13e   : > { %v950_v1 = vmax.f32 %v944_v62, 0.0 }
 0x13f   : > { %v949_v58 = vmax.f32 %v941_v54, 0.0 }
 0x141   : > { %v1317_v60 = vpack.c.bf16 %v949_v58, %v948_v57  ;;  %v926_v61 = vpop.f32.mrf.mxu3 }
 0x142   : > { %v927_v63 = vadd.f32 %v926_v61, %v908_v59 }
 0x143   : > { %1318 = vst [vmem:[%s206_s4] sm:$0xff] %v1317_v60  }
 0x144   : > { %v946_v0 = vadd.f32 %v945_v16, %v927_v63 }
 0x146   : > { %v951_v2 = vmax.f32 %v946_v0, 0.0 }
 0x148   : > { %v1322_v3 = vpack.c.bf16 %v951_v2, %v950_v1 }
 0x14a   : > { %1324 = vst [vmem:[%s206_s4 + $0x8] sm:$0xff] %v1322_v3  }
 0x14b PF: > { %s13_s14 = sadd.s32 1, %s1378_s14   ;;  %s1676_s12 = smov %s1374_s13 }
 0x14c   : > { %p10_p5 = scmp.ge.s32.totalorder %s13_s14, 4   ;;  %s1677_s13 = smov %s1679_s15 }
 0x14e   :  { %12 = sbr.rel (!%p10_p5) target bundleno = 2 (0x2), region = 65 }

// kernel: spatial_path.5
= control target key start
LH: loop header
LB: loop body
LE: loop exit
PB: predicated region body
PF: predicated region fallthrough
CT: control target
= control target key end

     0   :  { %s1296_s18 = smov 0   ;;  %s1298_s19 = smov 0   ;;  %s1528_s0 = inlined_call_operand.vmem [shape: bf16[2,1,4,32,64], index: 0, kind: input, shape index: {}]   ;;  %s1529_s1 = inlined_call_operand.vmem [shape: bf16[576,64], index: 1, kind: input, shape index: {}]   ;;  %s1530_s2 = inlined_call_operand.vmem [shape: f32[1,64], index: 2, kind: input, shape index: {}]   ;;  %s1531_s3 = inlined_call_operand.vmem [shape: bf16[64,128], index: 3, kind: input, shape index: {}]   ;;  %s1532_s4 = inlined_call_operand.vmem [shape: f32[1,128], index: 4, kind: input, shape index: {}]   ;;  %s1533_s5 = inlined_call_operand.vmem [shape: f32[2,16,128], index: 5, kind: output, shape index: {}]  }
   0x1   :  { %s1300_s20 = smov 0  }
   0x2 LB: > { %s27_s21 = sadd.s32 1, %s1259_s19  ;;  %p967_p0 = scmp.ge.s32.totalorder %s1263_s20, 1  ;;  %s1263_s20 = sphi %s1300_s20, %s15_s20   ;;  %s1259_s19 = sphi %s1298_s19, %s1537_s19   ;;  %s1255_s18 = sphi %s1296_s18, %s1536_s18  }
   0x3   : > { %p29_p1 = scmp.ge.s32.totalorder %s27_s21, 2  ;;  %p207_p2 = scmp.lt.s32.totalorder %s1263_s20, 3 }
   0x5   : > { %s1539_s21 = smov (%p29_p1, %s27_s21), 0  ;;  %p208_p3 = pnand %p967_p0, %p207_p2 }
   0x6   : > { %p243_p4 = scmp.lt.s32.totalorder (!%p208_p3), %s1255_s18, 1  ;;  %s1265_s15 = smov (!%p208_p3), 64  }
   0x7   : > { %211 = sbr.rel (%p208_p3) target bundleno = 451 (0x1c3), region = 40 }
   0xc   : > { %v1205_v0 = vld [vmem:[%s1529_s1 + $0xf8] sm:$0xff]  ;;  %s1541_s18 = smov (!%p243_p4, %s1255_s18), 1  ;;  %v1204_v2 = vld [vmem:[%s1529_s1 + $0xf0] sm:$0xff]  ;;  %vm285_vm0 = vsmask.f32 3328  ;;  %v1203_v5 = vld [vmem:[%s1529_s1 + $0xe8] sm:$0xff] }
   0xd   : > { %v1181_v1 = vld [vmem:[%s1529_s1 + $0x38] sm:$0xff]  ;;  %785 = vmatpush.bf16.msra.mxu3 %v1205_v0  ;;  %v1180_v3 = vld [vmem:[%s1529_s1 + $0x30] sm:$0xff]  ;;  %s1167_s7 = sshll.u32 %s1541_s18, 6  ;;  %vm286_vm1 = vsmask.f32 7440  ;;  %v1179_v8 = vld [vmem:[%s1529_s1 + $0x28] sm:$0xff] }
   0xe   : > { %743 = vmatpush.bf16.msra.mxu0 %v1181_v1  ;;  %v1197_v4 = vld [vmem:[%s1529_s1 + $0xb8] sm:$0xff]  ;;  %s1335_s10 = scalar_lea.vmem %s1528_s0, %s1167_s7  ;;  %v1202_v17 = vld [vmem:[%s1529_s1 + $0xe0] sm:$0xff]  ;;  %vm1359_vm2 = vmor %vm285_vm0, %vm286_vm1  ;;  %vm265_vm3 = vcmask 519168   ;;  %vm279_vm4 = vcmask 1043968   ;;  %vm739_vm5 = vcmask 523264   ;;  %s1168_s29 = sshll.u32 %s1541_s18, 4 }
   0xf   : > { %771 = vmatpush.bf16.msra.mxu2 %v1197_v4  ;;  %v972_v6 = vld [vmem:[%s1335_s10 + $0x10] sm:$0xf]  ;;  %v978_v7 = vld [vmem:[%s1335_s10 + $0x20] sm:$0xf]  ;;  %v979_v9 = vld [vmem:[%s1335_s10 + $0x24] sm:$0xf] }
  0x10   : > { %273 = vrot.lane.b32.xlu0 %v972_v6, %s1265_s15  ;;  %v338_v10 = vshrl.u32 %v978_v7, 16  ;;  %v341_v11 = vshll.u32 %v978_v7, 16  ;;  %v385_v12 = vld [vmem:[%s1335_s10 + $0x4] sm:$0xf]  ;;  %v347_v13 = vshll.u32 %v979_v9, 16  ;;  %v351_v14 = vshrl.u32 %v979_v9, 16 }
  0x11   : > { %786 = vmatpush.bf16.msra.mxu3 %v1204_v2  ;;  %v386_v15 = vld [vmem:[%s1335_s10 + $0x8] sm:$0xf]  ;;  %v387_v16 = vld [vmem:[%s1335_s10 + $0xc] sm:$0x1]  ;;  %v389_v20 = vshrl.u32 %v385_v12, 16  ;;  %v392_v21 = vshll.u32 %v385_v12, 16 }
  0x12   : > { %744 = vmatpush.bf16.msra.mxu0 %v1180_v3  ;;  %v340_v18 = vrot.slane %v338_v10, 4  ;;  %v343_v19 = vrot.slane %v341_v11, 5  ;;  %v980_v22 = vld [vmem:[%s1335_s10 + $0x28] sm:$0x1]  ;;  %v349_v23 = vrot.slane %v347_v13, 5  ;;  %v353_v24 = vrot.slane %v351_v14, 4 }
  0x13   : > { %v398_v25 = vshll.u32 %v386_v15, 16  ;;  %v402_v26 = vshrl.u32 %v386_v15, 16  ;;  %v981_v27 = vld [vmem:[%s1335_s10 + $0x14] sm:$0xf]  ;;  %v391_v29 = vrot.slane %v389_v20, 4  ;;  %v394_v30 = vrot.slane %v392_v21, 5 }
  0x14   : > { %v344_v28 = vor.u32 %v343_v19, %v340_v18  ;;  %v408_v31 = vshll.u32 %v387_v16, 16  ;;  %377 = vrot.lane.b32.xlu2 %v981_v27, %s1265_s15  ;;  %v973_v32 = vld [vmem:[%s1335_s10 + $0x14] sm:$0xf]  ;;  %v354_v38 = vor.u32 %v353_v24, %v349_v23  ;;  %v357_v39 = vshll.u32 %v980_v22, 16  ;;  %v982_v45 = vld [vmem:[%s1335_s10 + $0x18] sm:$0xf] }
  0x15   : > { %787 = vmatpush.bf16.msra.mxu3 %v1203_v5  ;;  %v400_v34 = vrot.slane %v398_v25, 5  ;;  %v404_v35 = vrot.slane %v402_v26, 4  ;;  %v395_v37 = vor.u32 %v394_v30, %v391_v29  ;;  %v974_v50 = vld [vmem:[%s1335_s10 + $0x20] sm:$0xf]  ;;  %v975_v52 = vld [vmem:[%s1335_s10 + $0x24] sm:$0xf] }
  0x16   : > { %745 = vmatpush.bf16.msra.mxu0 %v1179_v8  ;;  %v345_v36 = vrot.slane %v344_v28, 4  ;;  %v410_v41 = vrot.slane %v408_v31, 5  ;;  %v355_v47 = vrot.slane %v354_v38, 4  ;;  %v359_v48 = vrot.slane %v357_v39, 5  ;;  %v369_v53 = vld [vmem:[%s1335_s10 + $0x4] sm:$0xf] }
  0x17   : > { %v405_v40 = vor.u32 %v404_v35, %v400_v34  ;;  %v396_v43 = vrot.slane %v395_v37, 4  ;;  %371 = vst.msk [vmem:[#allocation2 + $0xc] sm:$0xf] %vm265_vm3, %v369_v53  ;;  %v1178_v54 = vld [vmem:[%s1529_s1 + $0x20] sm:$0xff]  ;;  %v1196_v55 = vld [vmem:[%s1529_s1 + $0xb0] sm:$0xff]  ;;  %v1201_v57 = vld [vmem:[%s1529_s1 + $0xd8] sm:$0xff] }
  0x18   : > { %275 = vrot.lane.b32.xlu0 %v973_v32, %s1265_s15  ;;  %v350_v42 = vsel %vm1359_vm2, %v345_v36, %v349_v23  ;;  %v360_v51 = vsel %vm1359_vm2, %v355_v47, %v359_v48  ;;  %v263_v56 = vld [vmem:[%s1335_s10] sm:$0xf]  ;;  %772 = vmatpush.bf16.msra.mxu2 %v1196_v55  ;;  %v1177_v58 = vld [vmem:[%s1529_s1 + $0x18] sm:$0xff]  ;;  %v1195_v60 = vld [vmem:[%s1529_s1 + $0xa8] sm:$0xff] }
  0x19   : > { %788 = vmatpush.bf16.msra.mxu3 %v1202_v17  ;;  %v406_v44 = vrot.slane %v405_v40, 4  ;;  %361 = vrot.lane.b32.xlu1 %v350_v42, %s1265_s15  ;;  %v401_v46 = vsel %vm1359_vm2, %v396_v43, %v400_v34  ;;  %266 = vst.msk [vmem:[#allocation2] sm:$0xf] %vm265_vm3, %v263_v56  ;;  %v1189_v59 = vld [vmem:[%s1529_s1 + $0x78] sm:$0xff]  ;;  %v370_v61 = vld [vmem:[%s1335_s10 + $0x8] sm:$0xf] }
  0x1a   : > { %414 = vst.msk [vmem:[#allocation2 + $0x10] sm:$0xf] %vm265_vm3, %v401_v46  ;;  %746 = vmatpush.bf16.msra.mxu0 %v1178_v54  ;;  %v1200_v62 = vld [vmem:[%s1529_s1 + $0xd0] sm:$0xff]  ;;  %757 = vmatpush.bf16.msra.mxu1 %v1189_v59  ;;  %v264_v0 = vld [vmem:[%s1335_s10 + $0x4] sm:$0xf]  ;;  %v1199_v4 = vld [vmem:[%s1529_s1 + $0xc8] sm:$0xff] }
  0x1b   : > { %v411_v49 = vsel %vm1359_vm2, %v406_v44, %v410_v41  ;;  %372 = vst.msk [vmem:[#allocation2 + $0x20] sm:$0xf] %vm265_vm3, %v370_v61  ;;  %v1176_v63 = vld [vmem:[%s1529_s1 + $0x10] sm:$0xff]  ;;  %v1194_v2 = vld [vmem:[%s1529_s1 + $0xa0] sm:$0xff]  ;;  %v1175_v5 = vld [vmem:[%s1529_s1 + $0x8] sm:$0xff] }
  0x1c   : > { %415 = vst.msk [vmem:[#allocation2 + $0x24] sm:$0xf] %vm265_vm3, %v411_v49  ;;  %379 = vrot.lane.b32.xlu2 %v982_v45, %s1265_s15  ;;  %773 = vmatpush.bf16.msra.mxu2 %v1195_v60  ;;  %v1188_v1 = vld [vmem:[%s1529_s1 + $0x70] sm:$0xff]  ;;  %v1187_v6 = vld [vmem:[%s1529_s1 + $0x68] sm:$0xff]  ;;  %v1193_v7 = vld [vmem:[%s1529_s1 + $0x98] sm:$0xff] }
  0x1d   : > { %789 = vmatpush.bf16.msra.mxu3 %v1201_v57  ;;  %267 = vst.msk [vmem:[#allocation2 + $0x14] sm:$0xf] %vm265_vm3, %v264_v0  ;;  %v976_v3 = vld [vmem:[%s1335_s10 + $0x30] sm:$0xf]  ;;  %v1198_v8 = vld [vmem:[%s1529_s1 + $0xc0] sm:$0xff]  ;;  %v1209_v20 = vld [vmem:[%s1529_s1 + $0x118] sm:$0xff] }
  0x1e   : > { %747 = vmatpush.bf16.msra.mxu0 %v1177_v58  ;;  %758 = vmatpush.bf16.msra.mxu1 %v1188_v1  ;;  %332 = vst.msk [vmem:[#allocation2 + $0x8] sm:$0xf] %vm265_vm3, %v976_v3  ;;  %v1174_v10 = vld [vmem:[%s1529_s1] sm:$0xff]  ;;  %v1192_v12 = vld [vmem:[%s1529_s1 + $0x90] sm:$0xff]  ;;  %v1185_v25 = vld [vmem:[%s1529_s1 + $0x58] sm:$0xff] }
  0x1f   : > { %v1186_v11 = vld [vmem:[%s1529_s1 + $0x60] sm:$0xff]  ;;  %v977_v15 = vld [vmem:[%s1335_s10 + $0x34] sm:$0xf]  ;;  %v1191_v26 = vld [vmem:[%s1529_s1 + $0x88] sm:$0xff] }
  0x20   : > { %321 = vrot.lane.b32.xlu0 %v974_v50, %s1265_s15  ;;  %774 = vmatpush.bf16.msra.mxu2 %v1194_v2  ;;  %v283_v13 = vld [vmem:[%s1335_s10 + $0x4] sm:$0xf]  ;;  %v282_v14 = vld [vmem:[%s1335_s10] sm:$0xf]  ;;  %333 = vst.msk [vmem:[#allocation2 + $0x1c] sm:$0xf] %vm265_vm3, %v977_v15 }
  0x21   : > { %363 = vrot.lane.b32.xlu1 %v360_v51, %s1265_s15  ;;  %790 = vmatpush.bf16.msra.mxu3 %v1200_v62  ;;  %v298_v16 = vshll.u32 %v283_v13, 16  ;;  %v302_v17 = vshrl.u32 %v283_v13, 16  ;;  %v289_v18 = vshrl.u32 %v282_v14, 16  ;;  %v292_v19 = vshll.u32 %v282_v14, 16  ;;  %v1208_v28 = vld [vmem:[%s1529_s1 + $0x110] sm:$0xff]  ;;  %v1190_v32 = vld [vmem:[%s1529_s1 + $0x80] sm:$0xff] }
  0x22   : > { %748 = vmatpush.bf16.msra.mxu0 %v1176_v63  ;;  %759 = vmatpush.bf16.msra.mxu1 %v1187_v6  ;;  %v1184_v31 = vld [vmem:[%s1529_s1 + $0x50] sm:$0xff]  ;;  %v284_v34 = vld [vmem:[%s1335_s10 + $0x8] sm:$0x1]  ;;  %v1206_v45 = vld [vmem:[%s1529_s1 + $0x100] sm:$0xff]  ;;  %s260_s10 = scalar_lea.vmem %s1533_s5, %s1168_s29 }
  0x23   : > { %v300_v21 = vrot.slane %v298_v16, 5  ;;  %v304_v22 = vrot.slane %v302_v17, 4  ;;  %v291_v23 = vrot.slane %v289_v18, 4  ;;  %v294_v24 = vrot.slane %v292_v19, 5  ;;  %v1207_v42 = vld [vmem:[%s1529_s1 + $0x108] sm:$0xff]  ;;  %v1182_v33 = vld [vmem:[%s1529_s1 + $0x40] sm:$0xff] }
  0x24   : > { %775 = vmatpush.bf16.msra.mxu2 %v1193_v7  ;;  %v308_v36 = vshll.u32 %v284_v34, 16  ;;  %v1183_v43 = vld [vmem:[%s1529_s1 + $0x48] sm:$0xff]  ;;  %v1001_v59 = vld [vmem:[#allocation2 + $0x10] sm:$0xf]  ;;  %v1173_v60 = vld [vmem:[#allocation2 + $0x20] sm:$0xf0] }
  0x25   : > { %791 = vmatpush.bf16.msra.mxu3 %v1199_v4  ;;  %v305_v29 = vor.u32 %v304_v22, %v300_v21  ;;  %v295_v30 = vor.u32 %v294_v24, %v291_v23  ;;  %v1002_v61 = vor.u32 %v1173_v60, %v1001_v59  ;;  %v1213_v1 = vld [vmem:[%s1531_s3 + $0x18] sm:$0xff]  ;;  %v1212_v2 = vld [vmem:[%s1531_s3 + $0x10] sm:$0xff]  ;;  %v1211_v3 = vld [vmem:[%s1531_s3 + $0x8] sm:$0xff] }
  0x26   : > { %749 = vmatpush.bf16.msra.mxu0 %v1175_v5  ;;  %760 = vmatpush.bf16.msra.mxu1 %v1186_v11  ;;  %v310_v38 = vrot.slane %v308_v36, 5  ;;  %v1210_v5 = vld [vmem:[%s1531_s3] sm:$0xff] }
  0x27   : > { %v306_v35 = vrot.slane %v305_v29, 4  ;;  %v296_v37 = vrot.slane %v295_v30, 4  ;;  %v1239_v7 = vld [vmem:[%s1530_s2] ss:$0 sm:$0xff] }
  0x28   : > { %776 = vmatpush.bf16.msra.mxu2 %v1192_v12  ;;  %v1240_v29 = vld [vmem:[%s1532_s4] ss:$0 sm:$0xff] }
  0x29   : > { %323 = vrot.lane.b32.xlu1 %v975_v52, %s1265_s15  ;;  %792 = vmatpush.bf16.msra.mxu3 %v1198_v8  ;;  %v301_v39 = vsel %vm1359_vm2, %v296_v37, %v300_v21  ;;  %v311_v41 = vsel %vm1359_vm2, %v306_v35, %v310_v38 }
  0x2a   : > { %750 = vmatpush.bf16.msra.mxu0 %v1174_v10  ;;  %761 = vmatpush.bf16.msra.mxu1 %v1185_v25  ;;  %314 = vst.msk [vmem:[#allocation2 + $0x4] sm:$0xf] %vm265_vm3, %v301_v39 }
  0x2b   : > { %315 = vst.msk [vmem:[#allocation2 + $0x18] sm:$0xf] %vm265_vm3, %v311_v41 }
  0x2c   : > { %777 = vmatpush.bf16.msra.mxu2 %v1191_v26 }
  0x2e   : > { %803 = vmatpush.bf16.msrb.mxu0 %v1209_v20  ;;  %762 = vmatpush.bf16.msra.mxu1 %v1184_v31 }
  0x30   : > { %778 = vmatpush.bf16.msra.mxu2 %v1190_v32 }
  0x32   : > { %804 = vmatpush.bf16.msrb.mxu0 %v1208_v28  ;;  %763 = vmatpush.bf16.msra.mxu1 %v1183_v43 }
  0x36   : > { %805 = vmatpush.bf16.msrb.mxu0 %v1207_v42  ;;  %764 = vmatpush.bf16.msra.mxu1 %v1182_v33 }
  0x3a   : > { %806 = vmatpush.bf16.msrb.mxu0 %v1206_v45  ;;  %859 = vmatpush.bf16.msrb.mxu1 %v1213_v1 }
  0x3e   : > { %860 = vmatpush.bf16.msrb.mxu1 %v1212_v2 }
  0x42   : > { %861 = vmatpush.bf16.msrb.mxu1 %v1211_v3 }
  0x46   : > { %862 = vmatpush.bf16.msrb.mxu1 %v1210_v5 }
  0x6e   : > { %v378_v9 = vpop.permute.xlu2 %377 }
  0x6f   : > { %383 = vst.msk [vmem:[#allocation2 + $0xc] sm:$0xf] %vm279_vm4, %v378_v9 }
  0x76   : > { %v380_v27 = vpop.permute.xlu2 %379  ;;  %v1170_v40 = vld [vmem:[#allocation2 + $0xc] sm:$0xf] }
  0x77   : > { %384 = vst.msk [vmem:[#allocation2 + $0x20] sm:$0xf] %vm279_vm4, %v380_v27 }
  0x7e   : > { %v995_v44 = vld [vmem:[#allocation2 + $0x1c] sm:$0xf0] }
  0x7f   : > { %v998_v46 = vor.u32 %v1170_v40, %v995_v44 }
  0x81   : > { %793 = vmatmul.bf16.vlgmr.msra.gmra.mxu3 %v998_v46 }
  0x82   : > { %v274_v47 = vpop.permute.xlu0 %273 }
  0x83   : > { %280 = vst.msk [vmem:[#allocation2] sm:$0xf] %vm279_vm4, %v274_v47 }
  0x8a   : > { %v276_v48 = vpop.permute.xlu0 %275  ;;  %v985_v50 = vld [vmem:[#allocation2] sm:$0xf] }
  0x8b   : > { %281 = vst.msk [vmem:[#allocation2 + $0x14] sm:$0xf] %vm279_vm4, %v276_v48  ;;  %v362_v49 = vpop.permute.xlu1 %361 }
  0x8c   : > { %367 = vst.msk [vmem:[#allocation2 + $0x8] sm:$0xf] %vm279_vm4, %v362_v49 }
  0x92   : > { %v1171_v51 = vld [vmem:[#allocation2 + $0x10] sm:$0xf0]  ;;  %v322_v52 = vpop.permute.xlu0 %321 }
  0x93   : > { %v364_v53 = vpop.permute.xlu1 %363  ;;  %v986_v54 = vor.u32 %v1171_v51, %v985_v50  ;;  %327 = vst.msk [vmem:[#allocation2 + $0x4] sm:$0xf] %vm279_vm4, %v322_v52  ;;  %v993_v56 = vld [vmem:[#allocation2 + $0x8] sm:$0xf] }
  0x94   : > { %368 = vst.msk [vmem:[#allocation2 + $0x1c] sm:$0xf] %vm279_vm4, %v364_v53 }
  0x95   : > { %751 = vmatmul.bf16.vlgmr.msra.gmra.mxu0 %v986_v54 }
  0x9a   : > { %v1169_v62 = vld [vmem:[#allocation2 + $0x4] sm:$0xf] }
  0x9b   : > { %v324_v55 = vpop.permute.xlu1 %323  ;;  %v1172_v57 = vld [vmem:[#allocation2 + $0x18] sm:$0xf0] }
  0x9c   : > { %328 = vst.msk [vmem:[#allocation2 + $0x18] sm:$0xf] %vm279_vm4, %v324_v55  ;;  %v994_v58 = vor.u32 %v1172_v57, %v993_v56 }
  0x9e   : > { %779 = vmatmul.bf16.vlgmr.msra.gmra.mxu2 %v994_v58 }
  0xa3   : > { %v987_v63 = vld [vmem:[#allocation2 + $0x14] sm:$0xf0] }
  0xa4   : > { %v990_v0 = vor.u32 %v1169_v62, %v987_v63 }
  0xa5   : > { %1147 = vmatmul.msk.bf16.vlgmr.msrb.gmra.mxu0 %vm739_vm5, %v1002_v61 }
  0xa6   : > { %765 = vmatmul.bf16.vlgmr.msra.gmra.mxu1 %v990_v0 }
 0x104   : > { %v794_v12 = vpop.f32.mrf.mxu3 }
 0x10c   : > { %v796_v21 = vpop.f32.mrf.mxu3 }
 0x112   : > { %v752_v4 = vpop.f32.mrf.mxu0 }
 0x113   : > { %v753_v8 = vadd.f32 %v1239_v7, %v752_v4 }
 0x11a   : > { %v754_v6 = vpop.f32.mrf.mxu0 }
 0x11b   : > { %v755_v15 = vadd.f32 %v1239_v7, %v754_v6 }
 0x121   : > { %v780_v9 = vpop.f32.mrf.mxu2 }
 0x122   : > { %v808_v13 = vpop.f32.mrf.mxu0 }
 0x123   : > { %v766_v10 = vpop.f32.mrf.mxu1 }
 0x124   : > { %v767_v11 = vadd.f32 %v766_v10, %v753_v8 }
 0x126   : > { %v781_v14 = vadd.f32 %v780_v9, %v767_v11 }
 0x128   : > { %v795_v17 = vadd.f32 %v794_v12, %v781_v14 }
 0x129   : > { %v782_v19 = vpop.f32.mrf.mxu2 }
 0x12a   : > { %v809_v22 = vadd.f32 %v808_v13, %v795_v17  ;;  %v810_v24 = vpop.f32.mrf.mxu0 }
 0x12b   : > { %v768_v16 = vpop.f32.mrf.mxu1 }
 0x12c   : > { %v769_v18 = vadd.f32 %v768_v16, %v755_v15  ;;  %v813_v26 = vmax.f32 %v809_v22, 0.0 }
 0x12e   : > { %v783_v20 = vadd.f32 %v782_v19, %v769_v18 }
 0x130   : > { %v797_v23 = vadd.f32 %v796_v21, %v783_v20 }
 0x132   : > { %v811_v25 = vadd.f32 %v810_v24, %v797_v23 }
 0x134   : > { %v814_v27 = vmax.f32 %v811_v25, 0.0 }
 0x136   : > { %v815_v28 = vpack.c.bf16 %v814_v27, %v813_v26 }
 0x138   : > { %1164 = vmatmul.msk.bf16.vlgmr.msrb.gmra.mxu1 %vm739_vm5, %v815_v28 }
 0x1b5   : > { %v864_v30 = vpop.f32.mrf.mxu1 }
 0x1b6   : > { %v865_v31 = vadd.f32 %v1240_v29, %v864_v30 }
 0x1b8   : > { %v869_v32 = vmax.f32 %v865_v31, 0.0 }
 0x1ba   : > { %871 = vst [vmem:[%s260_s10] sm:$0xff] %v869_v32 }
 0x1bd   : > { %v866_v34 = vpop.f32.mrf.mxu1 }
 0x1be   : > { %v867_v35 = vadd.f32 %v1240_v29, %v866_v34 }
 0x1c0   : > { %v870_v36 = vmax.f32 %v867_v35, 0.0 }
 0x1c2   : > { %872 = vst [vmem:[%s260_s10 + $0x8] sm:$0xff] %v870_v36 }
 0x1c3 PF: > { %s15_s20 = sadd.s32 1, %s1263_s20   ;;  %s1536_s18 = smov %s1259_s19 }
 0x1c4   : > { %p12_p5 = scmp.ge.s32.totalorder %s15_s20, 4   ;;  %s1537_s19 = smov %s1539_s21 }
 0x1c6   :  { %14 = sbr.rel (!%p12_p5) target bundleno = 2 (0x2), region = 73 }

</bundles_post_ra>
